<compile_context>
chip_gen: v6e
topology: v6e:2x2x1
jax: 0.10.0
libtpu: 0.0.40
codegen_flags: <defaults>
</compile_context>

<pallas_src>
import math

import jax
import jax.numpy as jnp
from jax.experimental import pallas as pl
from jax.experimental.pallas import tpu as pltpu


# -----------------------------------------------------------------------------
# Kernel
# -----------------------------------------------------------------------------
def mlp_kernel(x_ref,
               w1_ref, b1_ref,
               w2_ref, b2_ref,
               w3_ref, b3_ref,
               w4_ref, b4_ref,
               o_ref):
    # Block 1: Linear (BN scale folded into W/b) -> ReLU, bf16 downcast fused in.
    h = jnp.dot(x_ref[...], w1_ref[...], preferred_element_type=jnp.float32)
    h = jnp.maximum(h + b1_ref[...], 0.0).astype(jnp.bfloat16)

    # Block 2
    h = jnp.dot(h, w2_ref[...], preferred_element_type=jnp.float32)
    h = jnp.maximum(h + b2_ref[...], 0.0).astype(jnp.bfloat16)

    # Block 3
    h = jnp.dot(h, w3_ref[...], preferred_element_type=jnp.float32)
    h = jnp.maximum(h + b3_ref[...], 0.0).astype(jnp.bfloat16)

    # Output head (padded to 128 lanes for an unmasked, lane-dense bf16 store).
    out = jnp.dot(h, w4_ref[...], preferred_element_type=jnp.float32) + b4_ref[...]
    o_ref[...] = out.astype(o_ref.dtype)


# -----------------------------------------------------------------------------
# Wrapper
# -----------------------------------------------------------------------------
def polynomial_root_net(x, params, *, tb_target=1024, output_size=10):
    """x: [B, 6] float32 -> [B, 10] float32 (eval-mode forward).

    tb_target: batch-tile upper bound. Keep <= ~2048 so per-step VMEM
    (intermediates + double-buffered x/out streams) stays within the default
    scoped-VMEM limit on all of v5e/v6e/v7x.
    """
    B, in_features = x.shape
    k_pad = params["w1"].shape[0]        # 8   (padded contraction dim)
    out_pad = params["w4"].shape[1]      # 128 (padded head width)

    # Pad batch to sublane granularity.
    B_pad = ((max(B, 8) + 7) // 8) * 8

    # Tile choice: amortize the per-grid-step fixed cost with a large tile, but
    # keep >= 2 grid steps whenever the batch allows so the "parallel" batch
    # axis can be sharded across both v7x TensorCores (free on v5e/v6e).
    tb = min(tb_target, B_pad)
    if tb == B_pad and B_pad >= 16:
        tb = ((B_pad // 2 + 7) // 8) * 8
    tb = max(tb, 8)
    B_pad = ((B_pad + tb - 1) // tb) * tb

    # bf16 + padded input stream (halves the only per-tile input DMA).
    x_pad = jnp.pad(x.astype(jnp.bfloat16),
                    ((0, B_pad - B), (0, k_pad - in_features)))

    weights = [params["w1"], params["w2"], params["w3"], params["w4"]]
    biases = [params["b1"], params["b2"], params["b3"], params["b4"]]

    args = (x_pad,
            weights[0], biases[0],
            weights[1], biases[1],
            weights[2], biases[2],
            weights[3], biases[3])

    def resident_spec(arr):
        # Whole array as one block, same block index for every grid step ->
        # stays VMEM-resident across the batch loop (no per-step re-DMA).
        return pl.BlockSpec(arr.shape, lambda i: (0, 0))

    in_specs = [pl.BlockSpec((tb, k_pad), lambda i: (i, 0))]
    for w, b in zip(weights, biases):
        in_specs.append(resident_spec(w))
        in_specs.append(resident_spec(b))

    flops = 2 * B_pad * sum(w.shape[0] * w.shape[1] for w in weights)
    bytes_accessed = (
        sum(int(a.size) * a.dtype.itemsize for a in args)
        + B_pad * out_pad * 2            # bf16 output writeback
    )

    out = pl.pallas_call(
        mlp_kernel,
        out_shape=jax.ShapeDtypeStruct((B_pad, out_pad), jnp.bfloat16),
        grid=(B_pad // tb,),
        in_specs=in_specs,
        out_specs=pl.BlockSpec((tb, out_pad), lambda i: (i, 0)),
        compiler_params=pltpu.CompilerParams(
            dimension_semantics=("parallel",)),
        cost_estimate=pl.CostEstimate(flops=flops,
                                      transcendentals=0,
                                      bytes_accessed=bytes_accessed),
    )(*args)

    # Padded rows / lanes carry garbage (relu of folded bias); slice them off
    # before anything downstream can reduce over them.
    return out[:B, :output_size].astype(jnp.float32)


# -----------------------------------------------------------------------------
# Parameter init (mirrors PyTorch __init__) + BN folding + padding + bf16 cast
# -----------------------------------------------------------------------------
def init_params(key, input_size=6, output_size=10, hidden_size=512,
                num_layers=4, eps=1e-5, k_pad=8, out_pad=128):
    """Returns (raw, kernel_params).

    raw:            unfolded f32 Linear + BN params (for the pure-JAX reference).
    kernel_params:  BN folded into weights/biases, first-layer K padded to 8,
                    head padded to 128 lanes, weights in bf16, biases in f32 [1, F].
    """
    sizes = [input_size, hidden_size]
    for i in range(num_layers - 2):
        sizes.append(max(hidden_size // 2 ** (i + 1), 64))
    sizes.append(output_size)
    n_layers = len(sizes) - 1  # 4: 6 -> 512 -> 256 -> 128 -> 10

    keys = jax.random.split(key, n_layers)
    raw = {}
    ws, bs = [], []
    for li in range(n_layers):
        fan_in, fan_out = sizes[li], sizes[li + 1]
        bound = math.sqrt(6.0 / (fan_in + fan_out))          # xavier_uniform_
        w = jax.random.uniform(keys[li], (fan_in, fan_out),
                               dtype=jnp.float32, minval=-bound, maxval=bound)
        b = jnp.zeros((fan_out,), dtype=jnp.float32)          # constant_(bias, 0)
        raw[f"w{li + 1}"] = w
        raw[f"b{li + 1}"] = b
        ws.append(w)
        bs.append(b)
        if li < n_layers - 1:
            # Eval-mode BatchNorm1d affine from running stats (PyTorch defaults).
            gamma = jnp.ones((fan_out,), jnp.float32)
            beta = jnp.zeros((fan_out,), jnp.float32)
            run_mean = jnp.zeros((fan_out,), jnp.float32)
            run_var = jnp.ones((fan_out,), jnp.float32)
            scale = gamma / jnp.sqrt(run_var + eps)
            shift = beta - run_mean * scale
            raw[f"s{li + 1}"] = scale
            raw[f"t{li + 1}"] = shift

    # Fold BN affine into adjacent Linear layers.
    # Folding the scale through ReLU (relu(z)*s == relu(z*s)) requires s > 0
    # elementwise; guard it so a hypothetical trained checkpoint with negative
    # gamma cannot silently produce wrong results.
    folded_w, folded_b = [], []
    carry_shift = None
    for li in range(n_layers):
        w, b = ws[li], bs[li]
        if carry_shift is not None:
            b = b + carry_shift @ w            # absorb previous layer's BN shift
        if li < n_layers - 1:
            scale = raw[f"s{li + 1}"]
            assert bool(jnp.all(scale > 0)), "BN fold through ReLU needs scale > 0"
            w = w * scale[None, :]
            b = b * scale
            carry_shift = raw[f"t{li + 1}"]
        folded_w.append(w)
        folded_b.append(b)

    # Pad first-layer contraction (6 -> 8) and head outputs (10 -> 128, lane-dense).
    folded_w[0] = jnp.pad(folded_w[0], ((0, k_pad - input_size), (0, 0)))
    folded_w[-1] = jnp.pad(folded_w[-1], ((0, 0), (0, out_pad - output_size)))
    folded_b[-1] = jnp.pad(folded_b[-1], (0, out_pad - output_size))

    kernel_params = {}
    for li in range(n_layers):
        kernel_params[f"w{li + 1}"] = folded_w[li].astype(jnp.bfloat16)
        kernel_params[f"b{li + 1}"] = folded_b[li].reshape(1, -1).astype(jnp.float32)
    return raw, kernel_params


# -----------------------------------------------------------------------------
# Pure-JAX reference (eval-mode PyTorch semantics, f32 throughout)
# -----------------------------------------------------------------------------
def reference_forward(x, raw):
    h = jnp.maximum(x @ raw["w1"] + raw["b1"], 0.0)
    h = h * raw["s1"] + raw["t1"]
    h = jnp.maximum(h @ raw["w2"] + raw["b2"], 0.0)
    h = h * raw["s2"] + raw["t2"]
    h = jnp.maximum(h @ raw["w3"] + raw["b3"], 0.0)
    h = h * raw["s3"] + raw["t3"]
    return h @ raw["w4"] + raw["b4"]


if __name__ == "__main__":
    key = jax.random.PRNGKey(0)
    pkey, xkey = jax.random.split(key)

    raw, params = init_params(pkey)

    # Small batch, but enough to exercise >= 2 grid steps (tb auto-splits).
    B = 256
    x = jax.random.normal(xkey, (B, 6), dtype=jnp.float32)

    out = jax.block_until_ready(polynomial_root_net(x, params))
    ref = jax.block_until_ready(reference_forward(x, raw))

    assert out.shape == (B, 10)
    # bf16 weights/activations/output vs the pure-f32 reference -> loose tolerance.
    max_err = float(jnp.max(jnp.abs(out - ref)))
    assert jnp.allclose(out, ref, atol=3e-2, rtol=3e-2), (
        f"mismatch vs reference (max abs err {max_err})")

    print("KERNEL_OK")
</pallas_src>

<mosaic_0001>
module attributes {stable_mosaic.version = 11 : i64} {
  func.func @mlp_kernel(%arg0: i32, %arg1: memref<128x8xbf16, #tpu.memory_space<vmem>>, %arg2: memref<8x512xbf16, #tpu.memory_space<vmem>>, %arg3: memref<1x512xf32, #tpu.memory_space<vmem>>, %arg4: memref<512x256xbf16, #tpu.memory_space<vmem>>, %arg5: memref<1x256xf32, #tpu.memory_space<vmem>>, %arg6: memref<256x128xbf16, #tpu.memory_space<vmem>>, %arg7: memref<1x128xf32, #tpu.memory_space<vmem>>, %arg8: memref<128x128xbf16, #tpu.memory_space<vmem>>, %arg9: memref<1x128xf32, #tpu.memory_space<vmem>>, %arg10: memref<128x128xbf16, #tpu.memory_space<vmem>>) attributes {dimension_semantics = [#tpu.dimension_semantics<parallel>], iteration_bounds = array<i64: 2>, scalar_prefetch = 0 : i64, scratch_operands = 0 : i64, tpu.core_type = #tpu.core_type<tc>, window_params = [{transform_indices = @transform_0, window_bounds = array<i64: 128, 8>}, {pipeline_mode = #tpu.pipeline_mode<synchronous>, transform_indices = @transform_1, window_bounds = array<i64: 8, 512>}, {pipeline_mode = #tpu.pipeline_mode<synchronous>, transform_indices = @transform_2, window_bounds = array<i64: 1, 512>}, {pipeline_mode = #tpu.pipeline_mode<synchronous>, transform_indices = @transform_3, window_bounds = array<i64: 512, 256>}, {pipeline_mode = #tpu.pipeline_mode<synchronous>, transform_indices = @transform_4, window_bounds = array<i64: 1, 256>}, {pipeline_mode = #tpu.pipeline_mode<synchronous>, transform_indices = @transform_5, window_bounds = array<i64: 256, 128>}, {pipeline_mode = #tpu.pipeline_mode<synchronous>, transform_indices = @transform_6, window_bounds = array<i64: 1, 128>}, {pipeline_mode = #tpu.pipeline_mode<synchronous>, transform_indices = @transform_7, window_bounds = array<i64: 128, 128>}, {pipeline_mode = #tpu.pipeline_mode<synchronous>, transform_indices = @transform_8, window_bounds = array<i64: 1, 128>}, {transform_indices = @transform_9, window_bounds = array<i64: 128, 128>}]} {
    %c0 = arith.constant 0 : index
    %c0_0 = arith.constant 0 : index
    %0 = vector.load %arg1[%c0, %c0_0] : memref<128x8xbf16, #tpu.memory_space<vmem>>, vector<128x8xbf16>
    %c0_1 = arith.constant 0 : index
    %c0_2 = arith.constant 0 : index
    %1 = vector.load %arg2[%c0_1, %c0_2] : memref<8x512xbf16, #tpu.memory_space<vmem>>, vector<8x512xbf16>
    %cst = arith.constant dense<0.000000e+00> : vector<128x512xf32>
    %2 = tpu.matmul %0, %1, %cst {dimension_numbers = #tpu.dot_dimension_numbers<[1], [0], [0], [1], [0, 0, 1, 1], [], []>} : vector<128x8xbf16>, vector<8x512xbf16>, vector<128x512xf32> -> vector<128x512xf32>
    %c0_3 = arith.constant 0 : index
    %c0_4 = arith.constant 0 : index
    %3 = vector.load %arg3[%c0_3, %c0_4] : memref<1x512xf32, #tpu.memory_space<vmem>>, vector<1x512xf32>
    %4 = vector.broadcast %3 : vector<1x512xf32> to vector<128x512xf32>
    %5 = arith.addf %2, %4 : vector<128x512xf32>
    %cst_5 = arith.constant 0.000000e+00 : f32
    %6 = vector.broadcast %cst_5 : f32 to vector<128x512xf32>
    %7 = arith.maximumf %5, %6 : vector<128x512xf32>
    %8 = arith.truncf %7 : vector<128x512xf32> to vector<128x512xbf16>
    %c0_6 = arith.constant 0 : index
    %c0_7 = arith.constant 0 : index
    %9 = vector.load %arg4[%c0_6, %c0_7] : memref<512x256xbf16, #tpu.memory_space<vmem>>, vector<512x256xbf16>
    %cst_8 = arith.constant dense<0.000000e+00> : vector<128x256xf32>
    %10 = tpu.matmul %8, %9, %cst_8 {dimension_numbers = #tpu.dot_dimension_numbers<[1], [0], [0], [1], [0, 0, 1, 1], [], []>} : vector<128x512xbf16>, vector<512x256xbf16>, vector<128x256xf32> -> vector<128x256xf32>
    %c0_9 = arith.constant 0 : index
    %c0_10 = arith.constant 0 : index
    %11 = vector.load %arg5[%c0_9, %c0_10] : memref<1x256xf32, #tpu.memory_space<vmem>>, vector<1x256xf32>
    %12 = vector.broadcast %11 : vector<1x256xf32> to vector<128x256xf32>
    %13 = arith.addf %10, %12 : vector<128x256xf32>
    %cst_11 = arith.constant 0.000000e+00 : f32
    %14 = vector.broadcast %cst_11 : f32 to vector<128x256xf32>
    %15 = arith.maximumf %13, %14 : vector<128x256xf32>
    %16 = arith.truncf %15 : vector<128x256xf32> to vector<128x256xbf16>
    %c0_12 = arith.constant 0 : index
    %c0_13 = arith.constant 0 : index
    %17 = vector.load %arg6[%c0_12, %c0_13] : memref<256x128xbf16, #tpu.memory_space<vmem>>, vector<256x128xbf16>
    %cst_14 = arith.constant dense<0.000000e+00> : vector<128x128xf32>
    %18 = tpu.matmul %16, %17, %cst_14 {dimension_numbers = #tpu.dot_dimension_numbers<[1], [0], [0], [1], [0, 0, 1, 1], [], []>} : vector<128x256xbf16>, vector<256x128xbf16>, vector<128x128xf32> -> vector<128x128xf32>
    %c0_15 = arith.constant 0 : index
    %c0_16 = arith.constant 0 : index
    %19 = vector.load %arg7[%c0_15, %c0_16] : memref<1x128xf32, #tpu.memory_space<vmem>>, vector<1x128xf32>
    %20 = vector.broadcast %19 : vector<1x128xf32> to vector<128x128xf32>
    %21 = arith.addf %18, %20 : vector<128x128xf32>
    %cst_17 = arith.constant 0.000000e+00 : f32
    %22 = vector.broadcast %cst_17 : f32 to vector<128x128xf32>
    %23 = arith.maximumf %21, %22 : vector<128x128xf32>
    %24 = arith.truncf %23 : vector<128x128xf32> to vector<128x128xbf16>
    %c0_18 = arith.constant 0 : index
    %c0_19 = arith.constant 0 : index
    %25 = vector.load %arg8[%c0_18, %c0_19] : memref<128x128xbf16, #tpu.memory_space<vmem>>, vector<128x128xbf16>
    %cst_20 = arith.constant dense<0.000000e+00> : vector<128x128xf32>
    %26 = tpu.matmul %24, %25, %cst_20 {dimension_numbers = #tpu.dot_dimension_numbers<[1], [0], [0], [1], [0, 0, 1, 1], [], []>} : vector<128x128xbf16>, vector<128x128xbf16>, vector<128x128xf32> -> vector<128x128xf32>
    %c0_21 = arith.constant 0 : index
    %c0_22 = arith.constant 0 : index
    %27 = vector.load %arg9[%c0_21, %c0_22] : memref<1x128xf32, #tpu.memory_space<vmem>>, vector<1x128xf32>
    %28 = vector.broadcast %27 : vector<1x128xf32> to vector<128x128xf32>
    %29 = arith.addf %26, %28 : vector<128x128xf32>
    %30 = arith.truncf %29 : vector<128x128xf32> to vector<128x128xbf16>
    %c0_23 = arith.constant 0 : index
    %c0_24 = arith.constant 0 : index
    %31 = vector.load %arg10[%c0_23, %c0_24] : memref<128x128xbf16, #tpu.memory_space<vmem>>, vector<128x128xbf16>
    tpu.vector_store %arg10[%c0_23, %c0_24], %30 {strides = array<i32>} : memref<128x128xbf16, #tpu.memory_space<vmem>>, vector<128x128xbf16>,
    return
  }
  func.func @transform_0(%arg0: i32) -> (i32, i32) {
    %c0_i32 = arith.constant 0 : i32
    %c0_i32_0 = arith.constant 0 : i32
    return %arg0, %c0_i32 : i32, i32
  }
  func.func @transform_1(%arg0: i32) -> (i32, i32) {
    %c0_i32 = arith.constant 0 : i32
    %c0_i32_0 = arith.constant 0 : i32
    %c0_i32_1 = arith.constant 0 : i32
    return %c0_i32, %c0_i32_0 : i32, i32
  }
  func.func @transform_2(%arg0: i32) -> (i32, i32) {
    %c0_i32 = arith.constant 0 : i32
    %c0_i32_0 = arith.constant 0 : i32
    %c0_i32_1 = arith.constant 0 : i32
    return %c0_i32, %c0_i32_0 : i32, i32
  }
  func.func @transform_3(%arg0: i32) -> (i32, i32) {
    %c0_i32 = arith.constant 0 : i32
    %c0_i32_0 = arith.constant 0 : i32
    %c0_i32_1 = arith.constant 0 : i32
    return %c0_i32, %c0_i32_0 : i32, i32
  }
  func.func @transform_4(%arg0: i32) -> (i32, i32) {
    %c0_i32 = arith.constant 0 : i32
    %c0_i32_0 = arith.constant 0 : i32
    %c0_i32_1 = arith.constant 0 : i32
    return %c0_i32, %c0_i32_0 : i32, i32
  }
  func.func @transform_5(%arg0: i32) -> (i32, i32) {
    %c0_i32 = arith.constant 0 : i32
    %c0_i32_0 = arith.constant 0 : i32
    %c0_i32_1 = arith.constant 0 : i32
    return %c0_i32, %c0_i32_0 : i32, i32
  }
  func.func @transform_6(%arg0: i32) -> (i32, i32) {
    %c0_i32 = arith.constant 0 : i32
    %c0_i32_0 = arith.constant 0 : i32
    %c0_i32_1 = arith.constant 0 : i32
    return %c0_i32, %c0_i32_0 : i32, i32
  }
  func.func @transform_7(%arg0: i32) -> (i32, i32) {
    %c0_i32 = arith.constant 0 : i32
    %c0_i32_0 = arith.constant 0 : i32
    %c0_i32_1 = arith.constant 0 : i32
    return %c0_i32, %c0_i32_0 : i32, i32
  }
  func.func @transform_8(%arg0: i32) -> (i32, i32) {
    %c0_i32 = arith.constant 0 : i32
    %c0_i32_0 = arith.constant 0 : i32
    %c0_i32_1 = arith.constant 0 : i32
    return %c0_i32, %c0_i32_0 : i32, i32
  }
  func.func @transform_9(%arg0: i32) -> (i32, i32) {
    %c0_i32 = arith.constant 0 : i32
    %c0_i32_0 = arith.constant 0 : i32
    return %arg0, %c0_i32 : i32, i32
  }
}

</mosaic_0001>

<bundles_post_ra>
// kernel: tpu_custom_call.1
= control target key start
LH: loop header
LB: loop body
LE: loop exit
PB: predicated region body
PF: predicated region fallthrough
CT: control target
= control target key end

     0   :  { %14 = vsyncpa [#allocation3], 0  ;;  %s3341_s0 = inlined_call_operand.vmem [shape: bf16[256,8], index: 0, kind: input, shape index: {}]   ;;  %s3342_s1 = inlined_call_operand.vmem [shape: bf16[8,512], index: 1, kind: input, shape index: {}]   ;;  %s3343_s2 = inlined_call_operand.hbm [shape: f32[1,512], index: 2, kind: input, shape index: {}]   ;;  %s3344_s3 = inlined_call_operand.hbm [shape: bf16[512,256], index: 3, kind: input, shape index: {}]   ;;  %s3345_s4 = inlined_call_operand.hbm [shape: f32[1,256], index: 4, kind: input, shape index: {}]   ;;  %s3346_s5 = inlined_call_operand.vmem [shape: bf16[256,128], index: 5, kind: input, shape index: {}]   ;;  %s3347_s6 = inlined_call_operand.vmem [shape: f32[1,128], index: 6, kind: input, shape index: {}]   ;;  %s3348_s7 = inlined_call_operand.hbm [shape: bf16[128,128], index: 7, kind: input, shape index: {}]   ;;  %s3349_s8 = inlined_call_operand.vmem [shape: f32[1,128], index: 8, kind: input, shape index: {}]   ;;  %s3350_s9 = inlined_call_operand.hbm [shape: bf16[256,128], index: 9, kind: output, shape index: {}]  }
   0x1   :  { %15 = vsyncpa [#allocation6], 0 }
   0x2   :  { %16 = vsyncpa [#allocation9], 0 }
   0x3   :  { %17 = vsyncpa [#allocation4], 0 }
   0x4   :  { %19 = vsyncpa [#allocation4 + $0x1], 0  ;;  %s2922_s30 = smov 0   ;;  %s2924_s10 = smov 0  }
   0x5   :  { %s2926_s11 = smov 0   ;;  %s2928_s12 = smov 0  }
   0x6 LB: > { %s2943_s13 = sadd.s32 4294967295, %s2858_s12   ;;  %s2131_s14 = sadd.s32 4294967294, %s2858_s12   ;;  %s2858_s12 = sphi %s2928_s12, %s3368_s12   ;;  %s2854_s11 = sphi %s2926_s11, %s3367_s11   ;;  %s2850_s10 = sphi %s2924_s10, %s3366_s10   ;;  %s2846_s30 = sphi %s2922_s30, %s3365_s30  }
   0x7   : > { %s2947_s15 = sadd.s32 1, %s2858_s12   ;;  %s226_s16 = sadd.s32 1, %s2854_s11 }
   0x8   : > { %s223_s17 = ssub.s32 %s2858_s12, %s2947_s15  ;;  %p236_p0 = scmp.ne.s32.totalorder %s2854_s11, %s2850_s10 }
   0x9   : > { %p224_p1 = scmp.eq.s32.totalorder %s223_s17, 0  ;;  %p237_p2 = scmp.eq.s32.totalorder %s2943_s13, 1 }
   0xa   : > { %p242_p3 = scmp.ne.s32.totalorder %s2850_s10, %s2846_s30  ;;  %p243_p4 = scmp.eq.s32.totalorder %s2131_s14, 1 }
   0xb   : > { %s2958_s18 = scalar_select %p224_p1, %s2854_s11, %s226_s16  }
   0xc   : > { %p2960_p5 = por %p237_p2, %p236_p0  ;;  %p2964_p6 = por %p243_p4, %p242_p3 }
   0xd   : > { %p2132_p7 = scmp.ge.s32.totalorder %s2858_s12, 1  ;;  %p250_p8 = scmp.lt.s32.totalorder %s2858_s12, 3 }
   0xe   : > { %s3353_s19 = scalar_select %p2960_p5, 1, 0 }
   0xf   : > { %s3354_s20 = scalar_select %p2964_p6, 1, 0 }
  0x10   : > { %p3351_p9 = scmp.eq.s32.totalorder %s2943_s13, 0  ;;  %p2971_p10 = pnand %p2132_p7, %p250_p8 }
  0x11   : > { %s2860_s22 = smov [#allocation5]   ;;  %s2861_s25 = smov [#allocation2]  }
  0x12   : > { %s276_s23 = sshll.u32 %s2860_s22, 4  ;;  %p2481_p11 = pneg %p2971_p10  ;;  %s277_s23 = int_to_ptr.vmem [resolvable:$true] %s276_s23 }
  0x13   : > { %s266_s26 = sshll.u32 %s2861_s25, 4  ;;  %s2862_s27 = smov [#allocation7]   ;;  %s267_s26 = int_to_ptr.vmem [resolvable:$true] %s266_s26 }
  0x14   : > { %p2979_p12 = pnand %p3351_p9, %p2481_p11  ;;  %s290_s28 = sshll.u32 %s2862_s27, 4  ;;  %s291_s28 = int_to_ptr.vmem [resolvable:$true] %s290_s28 }
  0x15   : > { %s2693_s29 = scalar_lea.vmem %s277_s23, 8192  ;;  %p2701_p3 = scmp.lt.s32.totalorder %s277_s23, %s277_s23 }
  0x16   : > { %p2684_p13 = pneg %p2979_p12  ;;  %p2694_p0 = scmp.ne.s32.totalorder %s277_s23, %s2693_s29 }
  0x17   : > { %p2702_p4 = scmp.lt.s32.totalorder %s2693_s29, %s2693_s29 }
  0x18   : > { %p2696_p1 = pnand %p2694_p0, %p2684_p13 }
  0x19   : > { %p2703_p7 = por %p2702_p4, %p2701_p3 }
  0x1a   : > { %p2697_p2 = pneg %p2696_p1 }
  0x1c   : > { %p2704_p8 = pnand %p2703_p7, %p2697_p2 }
  0x1e   : > { %2707 = shalt.err (!%p2704_p8)
}
  0x1f   : > { %s2863_s14 = smov 128   ;;  %s2864_s16 = smov 8  }
  0x20   : > { %2487 = dma.hbm_to_vmem [thread:$0]  (!%p2979_p12), %s3344_s3, 8192, %s277_s23, [#allocation6], %s2863_s14, %s2863_s14, %s2864_s16  }
  0x21   : > { %s2719_s25 = scalar_lea.vmem %s267_s26, 64  ;;  %p2727_p9 = scmp.lt.s32.totalorder %s267_s26, %s267_s26 }
  0x22   : > { %p2720_p11 = scmp.ne.s32.totalorder %s267_s26, %s2719_s25  ;;  %p2728_p6 = scmp.lt.s32.totalorder %s2719_s25, %s2719_s25 }
  0x24   : > { %p2722_p0 = pnand %p2720_p11, %p2684_p13  ;;  %p2729_p3 = por %p2728_p6, %p2727_p9 }
  0x26   : > { %p2723_p1 = pneg %p2722_p0 }
  0x28   : > { %p2730_p2 = pnand %p2729_p3, %p2723_p1 }
  0x2a   : > { %2733 = shalt.err (!%p2730_p2)
}
  0x2b   : > { %2484 = dma.hbm_to_vmem [thread:$0]  (!%p2979_p12), %s3343_s2, 64, %s267_s26, [#allocation3]  }
  0x2c   : > { %s2745_s23 = scalar_lea.vmem %s291_s28, 32  ;;  %p2753_p11 = scmp.lt.s32.totalorder %s291_s28, %s291_s28 }
  0x2d   : > { %p2746_p4 = scmp.ne.s32.totalorder %s291_s28, %s2745_s23  ;;  %p2754_p0 = scmp.lt.s32.totalorder %s2745_s23, %s2745_s23 }
  0x2f   : > { %p2748_p7 = pnand %p2746_p4, %p2684_p13  ;;  %p2755_p5 = por %p2754_p0, %p2753_p11 }
  0x31   : > { %p2749_p8 = pneg %p2748_p7 }
  0x33   : > { %p2756_p6 = pnand %p2755_p5, %p2749_p8 }
  0x35   : > { %2759 = shalt.err (!%p2756_p6)
}
  0x36   : > { %2490 = dma.hbm_to_vmem [thread:$0]  (!%p2979_p12), %s3345_s4, 32, %s291_s28, [#allocation6]  }
  0x37   : > { %s2865_s26 = smov [#allocation8]  }
  0x38   : > { %s306_s17 = sshll.u32 %s2865_s26, 4  ;;  %s307_s17 = int_to_ptr.vmem [resolvable:$true] %s306_s17 }
  0x39   : > { %s2771_s22 = scalar_lea.vmem %s307_s17, 1024  ;;  %p2779_p2 = scmp.lt.s32.totalorder %s307_s17, %s307_s17 }
  0x3a   : > { %p2772_p9 = scmp.ne.s32.totalorder %s307_s17, %s2771_s22  ;;  %p2780_p4 = scmp.lt.s32.totalorder %s2771_s22, %s2771_s22 }
  0x3c   : > { %p2774_p1 = pnand %p2772_p9, %p2684_p13  ;;  %p2781_p5 = por %p2780_p4, %p2779_p2 }
  0x3e   : > { %p2775_p3 = pneg %p2774_p1 }
  0x40   : > { %p2782_p7 = pnand %p2781_p5, %p2775_p3 }
  0x42   : > { %2785 = shalt.err (!%p2782_p7)
}
  0x43   : > { %s2866_s25 = smov 64   ;;  %s2867_s27 = smov 4  }
  0x44   : > { %2493 = dma.hbm_to_vmem [thread:$0]  (!%p2979_p12), %s3348_s7, 1024, %s307_s17, [#allocation9], %s2866_s25, %s2866_s25, %s2867_s27  }
  0x45   : > { %334 = sbr.rel (%p2971_p10) target bundleno = 983 (0x3d7), region = 56  ;;  %p3357_p8 = scmp.eq.s32.totalorder (!%p2971_p10), %s2943_s13, 0 }
  0x4a   : > { %2829 = dma.done.wait (%p3357_p8), [#allocation3], 64   ;;  %p3358_p13 = pmov %p3357_p8 }
  0x4b   : > { %p3359_p11 = pmov %p3357_p8 }
  0x4c   : > { %2831 = vsyncadd (%p3358_p13), [#allocation3], 4294967232 }
  0x4d   : > { %2833 = dma.done.wait (%p3359_p11), [#allocation6], 8224   ;;  %p3360_p0 = pmov %p3357_p8 }
  0x4f   : > { %2835 = vsyncadd (%p3360_p0), [#allocation6], 4294959072  ;;  %p3361_p6 = pmov %p3360_p0 }
  0x50   : > { %p3362_p12 = pmov %p3360_p0 }
  0x51   : > { %2837 = dma.done.wait (%p3361_p6), [#allocation9], 1024  }
  0x52   : > { %2839 = vsyncadd (%p3362_p12), [#allocation9], 4294966272  ;;  %s2144_s21 = sshll.u32 %s2943_s13, 4  ;;  %v2868_v0 = vmov 0   ;;  %v406_v1 = vld [vmem:[%s3342_s1] sm:$0xff]  ;;  %vm505_vm0 = vcmask 1043456  }
  0x53   : > { %550 = vmatprep.mubr.bf16.mxu0 %v2868_v0  ;;  %663 = vmatprep.mubr.bf16.mxu1 %v2868_v0  ;;  %p383_p10 = scmp.lt.s32.totalorder %s2144_s21, 31  ;;  %v407_v2 = vld [vmem:[%s3342_s1 + $0x8] sm:$0xff]  ;;  %v2155_v3 = vcombine.high %v406_v1, %v406_v1  ;;  %v2154_v5 = vcombine.low %v406_v1, %v406_v1  ;;  %vm480_vm1 = vcmask 64512   ;;  %v2562_v11 = vld [vmem:[#allocation5 + $0x70] ss:$8 sps:$4 sm:$0xff]   ;;  %s379_s22 = sand.u32 1, %s2850_s10  }
  0x54   : > { %v2157_v4 = vcombine.high %v407_v2, %v407_v2  ;;  %v2156_v6 = vcombine.low %v407_v2, %v407_v2  ;;  %v2564_v12 = vld [vmem:[#allocation5 + $0x74] ss:$8 sps:$4 sm:$0xff]   ;;  %v2565_v13 = vld [vmem:[#allocation5 + $0x170] ss:$8 sps:$4 sm:$0xff]   ;;  %v2570_v15 = vld [vmem:[#allocation5 + $0x64] ss:$8 sps:$4 sm:$0xff]  }
  0x55   : > { %s3370_s21 = smov (!%p383_p10, %s2144_s21), 31  ;;  %2158 = vmatprep.subr.msk.bf16.mxu0 %vm505_vm0, %v2155_v3  ;;  %v507_v7 = vsel %vm505_vm0, %v2154_v5, 0  ;;  %v2567_v14 = vld [vmem:[#allocation5 + $0x174] ss:$8 sps:$4 sm:$0xff]   ;;  %v2568_v16 = vld [vmem:[#allocation5 + $0x60] ss:$8 sps:$4 sm:$0xff]  }
  0x56   : > { %s2145_s24 = sshll.u32 %s3370_s21, 2  ;;  %2167 = vmatprep.subr.msk.bf16.mxu1 %vm505_vm0, %v2157_v4  ;;  %v513_v8 = vsel %vm505_vm0, %v2156_v6, 0  ;;  %533 = vmatpush1.bf16.msra.mxu0 %v507_v7  ;;  %v2573_v17 = vld [vmem:[#allocation5 + $0x164] ss:$8 sps:$4 sm:$0xff]   ;;  %v2571_v18 = vld [vmem:[#allocation5 + $0x160] ss:$8 sps:$4 sm:$0xff]  }
  0x57   : > { %s3037_s16 = scalar_lea.vmem %s3341_s0, %s2145_s24  ;;  %646 = vmatpush1.bf16.msra.mxu1 %v513_v8  ;;  %1236 = vmatprep.subr.bf16.mxu0 %v2564_v12  ;;  %v2576_v19 = vld [vmem:[#allocation5 + $0x54] ss:$8 sps:$4 sm:$0xff]   ;;  %v2574_v21 = vld [vmem:[#allocation5 + $0x50] ss:$8 sps:$4 sm:$0xff]   ;;  %v2582_v23 = vld [vmem:[#allocation5 + $0x44] ss:$8 sps:$4 sm:$0xff]  }
  0x58   : > { %v2554_v9 = vld [vmem:[%s3037_s16] sm:$0xff]   ;;  %v2555_v10 = vld [vmem:[%s3037_s16 + $0x8] sm:$0xff]   ;;  %1349 = vmatprep.subr.bf16.mxu1 %v2567_v14  ;;  %v2577_v22 = vld [vmem:[#allocation5 + $0x150] ss:$8 sps:$4 sm:$0xff]   ;;  %s2143_s29 = sshll.u32 %s379_s22, 6  ;;  %s2303_s24 = sshll.u32 %s2943_s13, 10 }
  0x59   : > { %2159 = vmatmul.mubr.msk.bf16.vlgmr.msra.gmra.mxu0 %vm480_vm1, %v2554_v9  ;;  %v2579_v20 = vld [vmem:[#allocation5 + $0x154] ss:$8 sps:$4 sm:$0xff]   ;;  %v2556_v24 = vld [vmem:[%s3037_s16 + $0x10] sm:$0xff]   ;;  %v2580_v25 = vld [vmem:[#allocation5 + $0x40] ss:$8 sps:$4 sm:$0xff]   ;;  %s3280_s28 = scalar_lea.vmem [#allocation10], %s2143_s29 }
  0x5a   : > { %2168 = vmatmul.mubr.msk.bf16.vlgmr.msra.gmra.mxu1 %vm480_vm1, %v2554_v9  ;;  %560 = vmatprep.mubr.bf16.mxu0 %v2868_v0  ;;  %v2583_v26 = vld [vmem:[#allocation5 + $0x140] ss:$8 sps:$4 sm:$0xff]   ;;  %v2585_v27 = vld [vmem:[#allocation5 + $0x144] ss:$8 sps:$4 sm:$0xff]   ;;  %v2588_v28 = vld [vmem:[#allocation5 + $0x34] ss:$8 sps:$4 sm:$0xff]  }
  0x5b   : > { %673 = vmatprep.mubr.bf16.mxu1 %v2868_v0  ;;  %1237 = vmatpush1.bf16.msra.mxu0 %v2562_v11  ;;  %v2591_v29 = vld [vmem:[#allocation5 + $0x134] ss:$8 sps:$4 sm:$0xff]   ;;  %v2586_v30 = vld [vmem:[#allocation5 + $0x30] ss:$8 sps:$4 sm:$0xff]   ;;  %v2594_v32 = vld [vmem:[#allocation5 + $0x24] ss:$8 sps:$4 sm:$0xff]  }
  0x5c   : > { %1350 = vmatpush1.bf16.msra.mxu1 %v2565_v13  ;;  %1238 = vmatprep.subr.bf16.mxu0 %v2570_v15  ;;  %v2589_v31 = vld [vmem:[#allocation5 + $0x130] ss:$8 sps:$4 sm:$0xff]   ;;  %v2592_v34 = vld [vmem:[#allocation5 + $0x20] ss:$8 sps:$4 sm:$0xff]   ;;  %v2597_v36 = vld [vmem:[#allocation5 + $0x124] ss:$8 sps:$4 sm:$0xff]  }
  0x5d   : > { %1351 = vmatprep.subr.bf16.mxu1 %v2573_v17  ;;  %v2557_v33 = vld [vmem:[%s3037_s16 + $0x18] sm:$0xff]   ;;  %v2595_v35 = vld [vmem:[#allocation5 + $0x120] ss:$8 sps:$4 sm:$0xff]   ;;  %v2606_v41 = vld [vmem:[#allocation5 + $0x4] ss:$8 sps:$4 sm:$0xff]   ;;  %s2028_s21 = sshll.u32 %s3280_s28, 4  ;;  %s3290_s21 = int_to_ptr.vmem [resolvable:$true] %s2028_s21 }
  0x5e   : > { %v2600_v37 = vld [vmem:[#allocation5 + $0x14] ss:$8 sps:$4 sm:$0xff]   ;;  %v2598_v39 = vld [vmem:[#allocation5 + $0x10] ss:$8 sps:$4 sm:$0xff]   ;;  %v2604_v43 = vld [vmem:[#allocation5] ss:$8 sps:$4 sm:$0xff]  }
  0x5f   : > { %1239 = vmatpush1.bf16.msra.mxu0 %v2568_v16  ;;  %v2603_v38 = vld [vmem:[#allocation5 + $0x114] ss:$8 sps:$4 sm:$0xff]   ;;  %v2601_v40 = vld [vmem:[#allocation5 + $0x110] ss:$8 sps:$4 sm:$0xff]   ;;  %v2607_v44 = vld [vmem:[#allocation5 + $0x100] ss:$8 sps:$4 sm:$0xff]  }
  0x60   : > { %1352 = vmatpush1.bf16.msra.mxu1 %v2571_v18  ;;  %1240 = vmatprep.subr.bf16.mxu0 %v2576_v19  ;;  %v2558_v42 = vld [vmem:[%s3037_s16 + $0x20] sm:$0xff]   ;;  %v2609_v45 = vld [vmem:[#allocation5 + $0x104] ss:$8 sps:$4 sm:$0xff]   ;;  %v2610_v49 = vld [vmem:[#allocation5 + $0xf0] ss:$8 sps:$4 sm:$0xff]   ;;  %v410_v18 = vlaneseq  ;;  %s3301_s26 = scalar_lea.sflag [#allocation4], %s379_s22 }
  0x61   : > { %2160 = vmatmul.mubr.msk.bf16.gmra.mxu0 %vm480_vm1, %v2555_v10  ;;  %1353 = vmatprep.subr.bf16.mxu1 %v2579_v20  ;;  %v2612_v46 = vld [vmem:[#allocation5 + $0xf4] ss:$8 sps:$4 sm:$0xff]   ;;  %v2559_v48 = vld [vmem:[%s3037_s16 + $0x28] sm:$0xff]   ;;  %v2613_v50 = vld [vmem:[#allocation5 + $0x1f0] ss:$8 sps:$4 sm:$0xff]   ;;  %s2786_s13 = scalar_lea.vmem %s3290_s21, 1024 }
  0x62   : > { %2169 = vmatmul.mubr.msk.bf16.gmra.mxu1 %vm480_vm1, %v2555_v10  ;;  %570 = vmatprep.mubr.bf16.mxu0 %v2868_v0  ;;  %v2615_v47 = vld [vmem:[#allocation5 + $0x1f4] ss:$8 sps:$4 sm:$0xff]   ;;  %v2618_v51 = vld [vmem:[#allocation5 + $0xe4] ss:$8 sps:$4 sm:$0xff]   ;;  %v2616_v52 = vld [vmem:[#allocation5 + $0xe0] ss:$8 sps:$4 sm:$0xff]   ;;  %p2787_p9 = scmp.ne.s32.totalorder %s3290_s21, %s2786_s13 }
  0x63   : > { %683 = vmatprep.mubr.bf16.mxu1 %v2868_v0  ;;  %1241 = vmatpush1.bf16.msra.mxu0 %v2574_v21  ;;  %v2621_v53 = vld [vmem:[#allocation5 + $0x1e4] ss:$8 sps:$4 sm:$0xff]   ;;  %v2619_v54 = vld [vmem:[#allocation5 + $0x1e0] ss:$8 sps:$4 sm:$0xff]   ;;  %v2624_v55 = vld [vmem:[#allocation5 + $0xd4] ss:$8 sps:$4 sm:$0xff]  }
  0x64   : > { %1354 = vmatpush1.bf16.msra.mxu1 %v2577_v22  ;;  %1242 = vmatprep.subr.bf16.mxu0 %v2582_v23  ;;  %v2627_v56 = vld [vmem:[#allocation5 + $0x1d4] ss:$8 sps:$4 sm:$0xff]   ;;  %v2622_v57 = vld [vmem:[#allocation5 + $0xd0] ss:$8 sps:$4 sm:$0xff]   ;;  %v2630_v59 = vld [vmem:[#allocation5 + $0xc4] ss:$8 sps:$4 sm:$0xff]  }
  0x65   : > { %1355 = vmatprep.subr.bf16.mxu1 %v2585_v27  ;;  %v2625_v58 = vld [vmem:[#allocation5 + $0x1d0] ss:$8 sps:$4 sm:$0xff]   ;;  %v2628_v61 = vld [vmem:[#allocation5 + $0xc0] ss:$8 sps:$4 sm:$0xff]   ;;  %v2633_v62 = vld [vmem:[#allocation5 + $0x1c4] ss:$8 sps:$4 sm:$0xff]  }
  0x66   : > { %v2560_v60 = vld [vmem:[%s3037_s16 + $0x30] sm:$0xff]   ;;  %v2631_v63 = vld [vmem:[#allocation5 + $0x1c0] ss:$8 sps:$4 sm:$0xff]   ;;  %v2636_v1 = vld [vmem:[#allocation5 + $0xb4] ss:$8 sps:$4 sm:$0xff]   ;;  %v3086_v19 = vshrl.u32 %v410_v18, 7 }
  0x67   : > { %1243 = vmatpush1.bf16.msra.mxu0 %v2580_v25  ;;  %v2639_v2 = vld [vmem:[#allocation5 + $0x1b4] ss:$8 sps:$4 sm:$0xff]   ;;  %v2634_v3 = vld [vmem:[#allocation5 + $0xb0] ss:$8 sps:$4 sm:$0xff]   ;;  %v2642_v6 = vld [vmem:[#allocation5 + $0xa4] ss:$8 sps:$4 sm:$0xff]  }
  0x68   : > { %1356 = vmatpush1.bf16.msra.mxu1 %v2583_v26  ;;  %1244 = vmatprep.subr.bf16.mxu0 %v2588_v28  ;;  %v2637_v4 = vld [vmem:[#allocation5 + $0x1b0] ss:$8 sps:$4 sm:$0xff]   ;;  %v2645_v7 = vld [vmem:[#allocation5 + $0x1a4] ss:$8 sps:$4 sm:$0xff]   ;;  %v2640_v8 = vld [vmem:[#allocation5 + $0xa0] ss:$8 sps:$4 sm:$0xff]  }
  0x69   : > { %2161 = vmatmul.mubr.msk.bf16.gmra.mxu0 %vm480_vm1, %v2556_v24  ;;  %1357 = vmatprep.subr.bf16.mxu1 %v2591_v29  ;;  %v2561_v5 = vld [vmem:[%s3037_s16 + $0x38] sm:$0xff]   ;;  %v2643_v9 = vld [vmem:[#allocation5 + $0x1a0] ss:$8 sps:$4 sm:$0xff]   ;;  %v2654_v13 = vld [vmem:[#allocation5 + $0x84] ss:$8 sps:$4 sm:$0xff]   ;;  %v416_v20 = vsub.s32 1, %v3086_v19  ;;  %s3296_s16 = scalar_lea.hbm %s3350_s9, %s2303_s24 }
  0x6a   : > { %2170 = vmatmul.mubr.msk.bf16.gmra.mxu1 %vm480_vm1, %v2556_v24  ;;  %580 = vmatprep.mubr.bf16.mxu0 %v2868_v0  ;;  %v2651_v10 = vld [vmem:[#allocation5 + $0x194] ss:$8 sps:$4 sm:$0xff]   ;;  %v2646_v11 = vld [vmem:[#allocation5 + $0x90] ss:$8 sps:$4 sm:$0xff]   ;;  %v2657_v14 = vld [vmem:[#allocation5 + $0x184] ss:$8 sps:$4 sm:$0xff]  }
  0x6b   : > { %693 = vmatprep.mubr.bf16.mxu1 %v2868_v0  ;;  %1245 = vmatpush1.bf16.msra.mxu0 %v2586_v30  ;;  %v2649_v12 = vld [vmem:[#allocation5 + $0x190] ss:$8 sps:$4 sm:$0xff]   ;;  %v2652_v15 = vld [vmem:[#allocation5 + $0x80] ss:$8 sps:$4 sm:$0xff]   ;;  %v424_v21 = vsub.s32 3, %v3086_v19  ;;  %v412_v22 = vsub.s32 0, %v3086_v19 }
  0x6c   : > { %1358 = vmatpush1.bf16.msra.mxu1 %v2589_v31  ;;  %1246 = vmatprep.subr.bf16.mxu0 %v2594_v32  ;;  %v2655_v16 = vld [vmem:[#allocation5 + $0x180] ss:$8 sps:$4 sm:$0xff]   ;;  %v2658_v17 = vld [vmem:[%s3346_s5 + $0x78] sm:$0xff]   ;;  %v420_v23 = vsub.s32 2, %v3086_v19  ;;  %v408_v24 = vld [vmem:[#allocation2] sm:$0xf] }
  0x6d   : > { %1359 = vmatprep.subr.bf16.mxu1 %v2597_v36  ;;  %v3094_v27 = vrot.slane %v408_v24, %v416_v20  ;;  %v3096_v28 = vrot.slane %v408_v24, %v424_v21  ;;  %v3100_v29 = vrot.slane %v408_v24, %v412_v22  ;;  %p3363_p1 = scmp.ne.s32.totalorder %s3353_s19, 0  ;;  %s2869_s17 = smov [#allocation10]  }
  0x6e   : > { %v3102_v30 = vrot.slane %v408_v24, %v420_v23  ;;  %s2790_s25 = sshll.u32 %s2869_s17, 4  ;;  %s2791_s25 = int_to_ptr.vmem [resolvable:$false] %s2790_s25 }
  0x6f   : > { %1247 = vmatpush1.bf16.msra.mxu0 %v2592_v34  ;;  %p2788_p3 = pnand %p2787_p9, %p3363_p1  ;;  %s2792_s27 = scalar_lea.vmem %s2791_s25, 2048 }
  0x70   : > { %1360 = vmatpush1.bf16.msra.mxu1 %v2595_v35  ;;  %1248 = vmatprep.subr.bf16.mxu0 %v2600_v37  ;;  %p2793_p4 = scmp.lt.s32.totalorder %s3290_s21, %s2791_s25  ;;  %p2794_p5 = scmp.lt.s32.totalorder %s2792_s27, %s2786_s13 }
  0x71   : > { %2162 = vmatmul.mubr.msk.bf16.gmra.mxu0 %vm480_vm1, %v2557_v33  ;;  %1361 = vmatprep.subr.bf16.mxu1 %v2603_v38  ;;  %p2789_p2 = pneg %p2788_p3 }
  0x72   : > { %2171 = vmatmul.mubr.msk.bf16.gmra.mxu1 %vm480_vm1, %v2557_v33  ;;  %590 = vmatprep.mubr.bf16.mxu0 %v2868_v0  ;;  %p2795_p7 = por %p2794_p5, %p2793_p4 }
  0x73   : > { %703 = vmatprep.mubr.bf16.mxu1 %v2868_v0  ;;  %1249 = vmatpush1.bf16.msra.mxu0 %v2598_v39 }
  0x74   : > { %1362 = vmatpush1.bf16.msra.mxu1 %v2601_v40  ;;  %1250 = vmatprep.subr.bf16.mxu0 %v2606_v41  ;;  %p2796_p8 = pnand %p2795_p7, %p2789_p2 }
  0x75   : > { %1363 = vmatprep.subr.bf16.mxu1 %v2609_v45 }
  0x77   : > { %1251 = vmatpush1.bf16.msra.mxu0 %v2604_v43 }
  0x78   : > { %1364 = vmatpush1.bf16.msra.mxu1 %v2607_v44  ;;  %1252 = vmatprep.subr.bf16.mxu0 %v2612_v46 }
  0x79   : > { %2163 = vmatmul.mubr.msk.bf16.gmra.mxu0 %vm480_vm1, %v2558_v42  ;;  %1365 = vmatprep.subr.bf16.mxu1 %v2615_v47 }
  0x7a   : > { %2172 = vmatmul.mubr.msk.bf16.gmra.mxu1 %vm480_vm1, %v2558_v42  ;;  %600 = vmatprep.mubr.bf16.mxu0 %v2868_v0 }
  0x7b   : > { %713 = vmatprep.mubr.bf16.mxu1 %v2868_v0  ;;  %1253 = vmatpush2.bf16.msra.mxu0 %v2610_v49 }
  0x7c   : > { %1366 = vmatpush2.bf16.msra.mxu1 %v2613_v50  ;;  %1254 = vmatprep.subr.bf16.mxu0 %v2618_v51 }
  0x7d   : > { %1367 = vmatprep.subr.bf16.mxu1 %v2621_v53 }
  0x7f   : > { %1255 = vmatpush2.bf16.msra.mxu0 %v2616_v52 }
  0x80   : > { %1368 = vmatpush2.bf16.msra.mxu1 %v2619_v54  ;;  %1256 = vmatprep.subr.bf16.mxu0 %v2624_v55 }
  0x81   : > { %2164 = vmatmul.mubr.msk.bf16.gmra.mxu0 %vm480_vm1, %v2559_v48  ;;  %1369 = vmatprep.subr.bf16.mxu1 %v2627_v56 }
  0x82   : > { %2173 = vmatmul.mubr.msk.bf16.gmra.mxu1 %vm480_vm1, %v2559_v48  ;;  %610 = vmatprep.mubr.bf16.mxu0 %v2868_v0 }
  0x83   : > { %723 = vmatprep.mubr.bf16.mxu1 %v2868_v0  ;;  %1257 = vmatpush2.bf16.msra.mxu0 %v2622_v57 }
  0x84   : > { %1370 = vmatpush2.bf16.msra.mxu1 %v2625_v58  ;;  %1258 = vmatprep.subr.bf16.mxu0 %v2630_v59  ;;  %v2659_v59 = vld [vmem:[%s3346_s5 + $0x38] sm:$0xff]  }
  0x85   : > { %1371 = vmatprep.subr.bf16.mxu1 %v2633_v62 }
  0x87   : > { %1259 = vmatpush2.bf16.msra.mxu0 %v2628_v61 }
  0x88   : > { %1372 = vmatpush2.bf16.msra.mxu1 %v2631_v63  ;;  %1260 = vmatprep.subr.bf16.mxu0 %v2636_v1 }
  0x89   : > { %2165 = vmatmul.mubr.msk.bf16.gmra.mxu0 %vm480_vm1, %v2560_v60  ;;  %1373 = vmatprep.subr.bf16.mxu1 %v2639_v2  ;;  %v2660_v2 = vld [vmem:[%s3346_s5 + $0x70] sm:$0xff]  }
  0x8a   : > { %2174 = vmatmul.mubr.msk.bf16.gmra.mxu1 %vm480_vm1, %v2560_v60  ;;  %620 = vmatprep.mubr.bf16.mxu0 %v2868_v0 }
  0x8b   : > { %733 = vmatprep.mubr.bf16.mxu1 %v2868_v0  ;;  %1261 = vmatpush2.bf16.msra.mxu0 %v2634_v3  ;;  %v2648_v0 = vld [vmem:[#allocation5 + $0x94] ss:$8 sps:$4 sm:$0xff]  }
  0x8c   : > { %1374 = vmatpush2.bf16.msra.mxu1 %v2637_v4  ;;  %1262 = vmatprep.subr.bf16.mxu0 %v2642_v6 }
  0x8d   : > { %1375 = vmatprep.subr.bf16.mxu1 %v2645_v7 }
  0x8f   : > { %1263 = vmatpush2.bf16.msra.mxu0 %v2640_v8 }
  0x90   : > { %1376 = vmatpush2.bf16.msra.mxu1 %v2643_v9  ;;  %1264 = vmatprep.subr.bf16.mxu0 %v2648_v0 }
  0x91   : > { %2166 = vmatmul.mubr.msk.bf16.gmra.mxu0 %vm480_vm1, %v2561_v5  ;;  %1377 = vmatprep.subr.bf16.mxu1 %v2651_v10 }
  0x92   : > { %2175 = vmatmul.mubr.msk.bf16.gmra.mxu1 %vm480_vm1, %v2561_v5 }
  0x93   : > { %1265 = vmatpush2.bf16.msra.mxu0 %v2646_v11  ;;  %v2661_v11 = vld [vmem:[%s3346_s5 + $0x30] sm:$0xff]  }
  0x94   : > { %1378 = vmatpush2.bf16.msra.mxu1 %v2649_v12  ;;  %1266 = vmatprep.subr.bf16.mxu0 %v2654_v13 }
  0x95   : > { %1379 = vmatprep.subr.bf16.mxu1 %v2657_v14 }
  0x97   : > { %1267 = vmatpush2.bf16.msra.mxu0 %v2652_v15 }
  0x98   : > { %1380 = vmatpush2.bf16.msra.mxu1 %v2655_v16  ;;  %2351 = vmatprep.subr.bf16.mxu0 %v2658_v17  ;;  %v2662_v16 = vld [vmem:[%s3346_s5 + $0x68] sm:$0xff]  }
 0x119   : > { %v552_v25 = vpop.f32.mrf.mxu0 }
 0x11a   : > { %v665_v26 = vpop.f32.mrf.mxu1  ;;  %v553_v39 = vadd.f32 %v552_v25, %v3100_v29 }
 0x11b   : > { %v554_v31 = vpop.f32.mrf.mxu0  ;;  %v666_v40 = vadd.f32 %v665_v26, %v3102_v30 }
 0x11c   : > { %v667_v32 = vpop.f32.mrf.mxu1  ;;  %v555_v35 = vadd.f32 %v554_v31, %v3094_v27  ;;  %v744_v53 = vmax.f32 %v553_v39, 0.0 }
 0x11d   : > { %v556_v33 = vpop.f32.mrf.mxu0  ;;  %v668_v36 = vadd.f32 %v667_v32, %v3096_v28  ;;  %v746_v54 = vmax.f32 %v666_v40, 0.0  ;;  %v2664_v40 = vld [vmem:[%s3346_s5 + $0x60] sm:$0xff]  }
 0x11e   : > { %v669_v34 = vpop.f32.mrf.mxu1  ;;  %v557_v37 = vadd.f32 %v556_v33, %v3100_v29  ;;  %v745_v49 = vmax.f32 %v555_v35, 0.0 }
 0x11f   : > { %v670_v38 = vadd.f32 %v669_v34, %v3102_v30  ;;  %v558_v41 = vpop.f32.mrf.mxu0  ;;  %v747_v50 = vmax.f32 %v668_v36, 0.0  ;;  %v2663_v34 = vld [vmem:[%s3346_s5 + $0x28] sm:$0xff]  }
 0x120   : > { %v671_v42 = vpop.f32.mrf.mxu1  ;;  %v559_v43 = vadd.f32 %v558_v41, %v3094_v27  ;;  %v748_v45 = vmax.f32 %v557_v37, 0.0 }
 0x121   : > { %v672_v44 = vadd.f32 %v671_v42, %v3096_v28  ;;  %v750_v46 = vmax.f32 %v670_v38, 0.0  ;;  %v562_v47 = vpop.f32.mrf.mxu0 }
 0x122   : > { %v675_v48 = vpop.f32.mrf.mxu1  ;;  %v749_v51 = vmax.f32 %v559_v43, 0.0  ;;  %v808_v60 = vpack.c.bf16 %v748_v45, %v744_v53  ;;  %v563_v6 = vadd.f32 %v562_v47, %v3100_v29 }
 0x123   : > { %v751_v52 = vmax.f32 %v672_v44, 0.0  ;;  %v564_v55 = vpop.f32.mrf.mxu0  ;;  %v810_v61 = vpack.c.bf16 %v750_v46, %v746_v54  ;;  %v676_v7 = vadd.f32 %v675_v48, %v3102_v30 }
 0x124   : > { %v677_v56 = vpop.f32.mrf.mxu1  ;;  %v809_v57 = vpack.c.bf16 %v749_v51, %v745_v49  ;;  %v565_v62 = vadd.f32 %v564_v55, %v3094_v27  ;;  %v752_v24 = vmax.f32 %v563_v6, 0.0  ;;  %v2666_v55 = vld [vmem:[%s3346_s5 + $0x58] sm:$0xff]  }
 0x125   : > { %v811_v58 = vpack.c.bf16 %v751_v52, %v747_v50  ;;  %v566_v63 = vpop.f32.mrf.mxu0  ;;  %v678_v3 = vadd.f32 %v677_v56, %v3096_v28  ;;  %v754_v25 = vmax.f32 %v676_v7, 0.0  ;;  %v2665_v50 = vld [vmem:[%s3346_s5 + $0x20] sm:$0xff]  }
 0x126   : > { %v679_v1 = vpop.f32.mrf.mxu1  ;;  %v567_v4 = vadd.f32 %v566_v63, %v3100_v29  ;;  %1268 = vmatprep.mubr.bf16.mxu0 %v809_v57  ;;  %v753_v17 = vmax.f32 %v565_v62, 0.0 }
 0x127   : > { %v680_v5 = vadd.f32 %v679_v1, %v3102_v30  ;;  %1381 = vmatprep.mubr.bf16.mxu1 %v811_v58  ;;  %v568_v8 = vpop.f32.mrf.mxu0  ;;  %1269 = vmatmul.mubr.bf16.vlgmr.msra.gmra.mxu0 %v808_v60  ;;  %v755_v18 = vmax.f32 %v678_v3, 0.0  ;;  %v2667_v3 = vld [vmem:[%s3346_s5 + $0x18] sm:$0xff]  }
 0x128   : > { %v681_v9 = vpop.f32.mrf.mxu1  ;;  %1382 = vmatmul.mubr.bf16.vlgmr.msra.gmra.mxu1 %v810_v61  ;;  %v569_v0 = vadd.f32 %v568_v8, %v3094_v27  ;;  %2352 = vmatpush3.bf16.msra.mxu0 %v2659_v59  ;;  %v756_v12 = vmax.f32 %v567_v4, 0.0 }
 0x129   : > { %v682_v10 = vadd.f32 %v681_v9, %v3096_v28  ;;  %v758_v13 = vmax.f32 %v680_v5, 0.0  ;;  %v572_v14 = vpop.f32.mrf.mxu0  ;;  %2353 = vmatprep.subr.bf16.mxu0 %v2660_v2  ;;  %v2668_v9 = vld [vmem:[%s3346_s5 + $0x50] sm:$0xff]  }
 0x12a   : > { %v685_v15 = vpop.f32.mrf.mxu1  ;;  %v757_v21 = vmax.f32 %v569_v0, 0.0  ;;  %v812_v35 = vpack.c.bf16 %v756_v12, %v752_v24  ;;  %v573_v44 = vadd.f32 %v572_v14, %v3100_v29 }
 0x12b   : > { %v759_v23 = vmax.f32 %v682_v10, 0.0  ;;  %v574_v26 = vpop.f32.mrf.mxu0  ;;  %v814_v36 = vpack.c.bf16 %v758_v13, %v754_v25  ;;  %v686_v45 = vadd.f32 %v685_v15, %v3102_v30 }
 0x12c   : > { %v687_v31 = vpop.f32.mrf.mxu1  ;;  %v813_v32 = vpack.c.bf16 %v757_v21, %v753_v17  ;;  %2354 = vmatpush3.bf16.msra.mxu0 %v2661_v11  ;;  %v575_v37 = vadd.f32 %v574_v26, %v3094_v27  ;;  %v760_v60 = vmax.f32 %v573_v44, 0.0  ;;  %v2670_v26 = vld [vmem:[%s3346_s5 + $0x48] sm:$0xff]  }
 0x12d   : > { %v815_v33 = vpack.c.bf16 %v759_v23, %v755_v18  ;;  %v576_v38 = vpop.f32.mrf.mxu0  ;;  %2355 = vmatprep.subr.bf16.mxu0 %v2662_v16  ;;  %v688_v41 = vadd.f32 %v687_v31, %v3096_v28  ;;  %v762_v61 = vmax.f32 %v686_v45, 0.0  ;;  %v2669_v18 = vld [vmem:[%s3346_s5 + $0x10] sm:$0xff]  }
 0x12e   : > { %v689_v39 = vpop.f32.mrf.mxu1  ;;  %v577_v42 = vadd.f32 %v576_v38, %v3100_v29  ;;  %1278 = vmatprep.mubr.bf16.mxu0 %v813_v32  ;;  %v761_v56 = vmax.f32 %v575_v37, 0.0 }
 0x12f   : > { %v690_v43 = vadd.f32 %v689_v39, %v3102_v30  ;;  %1391 = vmatprep.mubr.bf16.mxu1 %v815_v33  ;;  %v578_v46 = vpop.f32.mrf.mxu0  ;;  %1279 = vmatmul.mubr.bf16.gmra.mxu0 %v812_v35  ;;  %v763_v57 = vmax.f32 %v688_v41, 0.0 }
 0x130   : > { %v691_v47 = vpop.f32.mrf.mxu1  ;;  %1392 = vmatmul.mubr.bf16.gmra.mxu1 %v814_v36  ;;  %v579_v48 = vadd.f32 %v578_v46, %v3094_v27  ;;  %2356 = vmatpush3.bf16.msra.mxu0 %v2663_v34  ;;  %v764_v51 = vmax.f32 %v577_v42, 0.0 }
 0x131   : > { %v692_v49 = vadd.f32 %v691_v47, %v3096_v28  ;;  %v766_v52 = vmax.f32 %v690_v43, 0.0  ;;  %v582_v53 = vpop.f32.mrf.mxu0  ;;  %2357 = vmatprep.subr.bf16.mxu0 %v2664_v40 }
 0x132   : > { %v695_v54 = vpop.f32.mrf.mxu1  ;;  %v765_v58 = vmax.f32 %v579_v48, 0.0  ;;  %v816_v4 = vpack.c.bf16 %v764_v51, %v760_v60  ;;  %v583_v12 = vadd.f32 %v582_v53, %v3100_v29 }
 0x133   : > { %v767_v59 = vmax.f32 %v692_v49, 0.0  ;;  %v584_v62 = vpop.f32.mrf.mxu0  ;;  %v818_v5 = vpack.c.bf16 %v766_v52, %v762_v61  ;;  %v696_v13 = vadd.f32 %v695_v54, %v3102_v30 }
 0x134   : > { %v697_v63 = vpop.f32.mrf.mxu1  ;;  %v817_v1 = vpack.c.bf16 %v765_v58, %v761_v56  ;;  %2358 = vmatpush3.bf16.msra.mxu0 %v2665_v50  ;;  %v585_v6 = vadd.f32 %v584_v62, %v3094_v27  ;;  %v768_v35 = vmax.f32 %v583_v12, 0.0 }
 0x135   : > { %v819_v2 = vpack.c.bf16 %v767_v59, %v763_v57  ;;  %v586_v7 = vpop.f32.mrf.mxu0  ;;  %2359 = vmatprep.subr.bf16.mxu0 %v2666_v55  ;;  %v698_v0 = vadd.f32 %v697_v63, %v3096_v28  ;;  %v770_v36 = vmax.f32 %v696_v13, 0.0 }
 0x136   : > { %v699_v8 = vpop.f32.mrf.mxu1  ;;  %v587_v10 = vadd.f32 %v586_v7, %v3100_v29  ;;  %1288 = vmatprep.mubr.bf16.mxu0 %v817_v1  ;;  %v769_v31 = vmax.f32 %v585_v6, 0.0 }
 0x137   : > { %v700_v11 = vadd.f32 %v699_v8, %v3102_v30  ;;  %1401 = vmatprep.mubr.bf16.mxu1 %v819_v2  ;;  %v588_v14 = vpop.f32.mrf.mxu0  ;;  %1289 = vmatmul.mubr.bf16.gmra.mxu0 %v816_v4  ;;  %v771_v32 = vmax.f32 %v698_v0, 0.0 }
 0x138   : > { %v701_v15 = vpop.f32.mrf.mxu1  ;;  %1402 = vmatmul.mubr.bf16.gmra.mxu1 %v818_v5  ;;  %v589_v16 = vadd.f32 %v588_v14, %v3094_v27  ;;  %2360 = vmatpush3.bf16.msra.mxu0 %v2667_v3  ;;  %v772_v21 = vmax.f32 %v587_v10, 0.0 }
 0x139   : > { %v702_v17 = vadd.f32 %v701_v15, %v3096_v28  ;;  %v774_v23 = vmax.f32 %v700_v11, 0.0  ;;  %v592_v24 = vpop.f32.mrf.mxu0  ;;  %2361 = vmatprep.subr.bf16.mxu0 %v2668_v9 }
 0x13a   : > { %v705_v25 = vpop.f32.mrf.mxu1  ;;  %v773_v33 = vmax.f32 %v589_v16, 0.0  ;;  %v820_v41 = vpack.c.bf16 %v772_v21, %v768_v35  ;;  %v593_v49 = vadd.f32 %v592_v24, %v3100_v29 }
 0x13b   : > { %v775_v34 = vmax.f32 %v702_v17, 0.0  ;;  %v594_v37 = vpop.f32.mrf.mxu0  ;;  %v822_v42 = vpack.c.bf16 %v774_v23, %v770_v36  ;;  %v706_v50 = vadd.f32 %v705_v25, %v3102_v30 }
 0x13c   : > { %v707_v38 = vpop.f32.mrf.mxu1  ;;  %v821_v39 = vpack.c.bf16 %v773_v33, %v769_v31  ;;  %2362 = vmatpush3.bf16.msra.mxu0 %v2669_v18  ;;  %v595_v43 = vadd.f32 %v594_v37, %v3094_v27  ;;  %v776_v63 = vmax.f32 %v593_v49, 0.0 }
 0x13d   : > { %v823_v40 = vpack.c.bf16 %v775_v34, %v771_v32  ;;  %v596_v44 = vpop.f32.mrf.mxu0  ;;  %2363 = vmatprep.subr.bf16.mxu0 %v2670_v26  ;;  %v708_v46 = vadd.f32 %v707_v38, %v3096_v28  ;;  %v778_v1 = vmax.f32 %v706_v50, 0.0 }
 0x13e   : > { %v709_v45 = vpop.f32.mrf.mxu1  ;;  %v597_v47 = vadd.f32 %v596_v44, %v3100_v29  ;;  %1298 = vmatprep.mubr.bf16.mxu0 %v821_v39  ;;  %v777_v59 = vmax.f32 %v595_v43, 0.0 }
 0x13f   : > { %v710_v48 = vadd.f32 %v709_v45, %v3102_v30  ;;  %1411 = vmatprep.mubr.bf16.mxu1 %v823_v40  ;;  %v598_v51 = vpop.f32.mrf.mxu0  ;;  %1299 = vmatmul.mubr.bf16.gmra.mxu0 %v820_v41  ;;  %v779_v60 = vmax.f32 %v708_v46, 0.0 }
 0x140   : > { %v711_v52 = vpop.f32.mrf.mxu1  ;;  %1412 = vmatmul.mubr.bf16.gmra.mxu1 %v822_v42  ;;  %v599_v53 = vadd.f32 %v598_v51, %v3094_v27  ;;  %v780_v55 = vmax.f32 %v597_v47, 0.0 }
 0x141   : > { %v712_v54 = vadd.f32 %v711_v52, %v3096_v28  ;;  %v782_v56 = vmax.f32 %v710_v48, 0.0  ;;  %v602_v57 = vpop.f32.mrf.mxu0 }
 0x142   : > { %v715_v58 = vpop.f32.mrf.mxu1  ;;  %v781_v61 = vmax.f32 %v599_v53, 0.0  ;;  %v824_v6 = vpack.c.bf16 %v780_v55, %v776_v63  ;;  %v603_v13 = vadd.f32 %v602_v57, %v3100_v29 }
 0x143   : > { %v783_v62 = vmax.f32 %v712_v54, 0.0  ;;  %v604_v2 = vpop.f32.mrf.mxu0  ;;  %v826_v7 = vpack.c.bf16 %v782_v56, %v778_v1  ;;  %v716_v14 = vadd.f32 %v715_v58, %v3102_v30 }
 0x144   : > { %v717_v3 = vpop.f32.mrf.mxu1  ;;  %v825_v4 = vpack.c.bf16 %v781_v61, %v777_v59  ;;  %v605_v8 = vadd.f32 %v604_v2, %v3094_v27  ;;  %v784_v34 = vmax.f32 %v603_v13, 0.0 }
 0x145   : > { %v827_v5 = vpack.c.bf16 %v783_v62, %v779_v60  ;;  %v606_v9 = vpop.f32.mrf.mxu0  ;;  %v718_v10 = vadd.f32 %v717_v3, %v3096_v28  ;;  %v786_v35 = vmax.f32 %v716_v14, 0.0 }
 0x146   : > { %v719_v0 = vpop.f32.mrf.mxu1  ;;  %v607_v11 = vadd.f32 %v606_v9, %v3100_v29  ;;  %1308 = vmatprep.mubr.bf16.mxu0 %v825_v4  ;;  %v785_v26 = vmax.f32 %v605_v8, 0.0 }
 0x147   : > { %v720_v12 = vadd.f32 %v719_v0, %v3102_v30  ;;  %1421 = vmatprep.mubr.bf16.mxu1 %v827_v5  ;;  %v608_v15 = vpop.f32.mrf.mxu0  ;;  %1309 = vmatmul.mubr.bf16.gmra.mxu0 %v824_v6  ;;  %v787_v31 = vmax.f32 %v718_v10, 0.0 }
 0x148   : > { %v721_v16 = vpop.f32.mrf.mxu1  ;;  %1422 = vmatmul.mubr.bf16.gmra.mxu1 %v826_v7  ;;  %v609_v17 = vadd.f32 %v608_v15, %v3094_v27  ;;  %v788_v21 = vmax.f32 %v607_v11, 0.0 }
 0x149   : > { %v722_v18 = vadd.f32 %v721_v16, %v3096_v28  ;;  %v790_v23 = vmax.f32 %v720_v12, 0.0  ;;  %v612_v24 = vpop.f32.mrf.mxu0 }
 0x14a   : > { %v725_v25 = vpop.f32.mrf.mxu1  ;;  %v789_v32 = vmax.f32 %v609_v17, 0.0  ;;  %v828_v40 = vpack.c.bf16 %v788_v21, %v784_v34  ;;  %v613_v48 = vadd.f32 %v612_v24, %v3100_v29 }
 0x14b   : > { %v791_v33 = vmax.f32 %v722_v18, 0.0  ;;  %v614_v36 = vpop.f32.mrf.mxu0  ;;  %v830_v41 = vpack.c.bf16 %v790_v23, %v786_v35  ;;  %v726_v49 = vadd.f32 %v725_v25, %v3102_v30  ;;  %v2673_v35 = vld [vmem:[%s3346_s5] sm:$0xff]  }
 0x14c   : > { %v727_v37 = vpop.f32.mrf.mxu1  ;;  %v829_v38 = vpack.c.bf16 %v789_v32, %v785_v26  ;;  %v615_v42 = vadd.f32 %v614_v36, %v3094_v27  ;;  %v792_v62 = vmax.f32 %v613_v48, 0.0  ;;  %v2674_v36 = vld [vmem:[#allocation8 + $0x38] sm:$0xff]  }
 0x14d   : > { %v831_v39 = vpack.c.bf16 %v791_v33, %v787_v31  ;;  %v616_v43 = vpop.f32.mrf.mxu0  ;;  %v728_v45 = vadd.f32 %v727_v37, %v3096_v28  ;;  %v794_v63 = vmax.f32 %v726_v49, 0.0  ;;  %v2675_v37 = vld [vmem:[#allocation8 + $0x30] sm:$0xff]   ;;  %2431 = vmatprep.subr.bf16.mxu1 %v2674_v36 }
 0x14e   : > { %v729_v44 = vpop.f32.mrf.mxu1  ;;  %v617_v46 = vadd.f32 %v616_v43, %v3100_v29  ;;  %1318 = vmatprep.mubr.bf16.mxu0 %v829_v38  ;;  %v793_v58 = vmax.f32 %v615_v42, 0.0  ;;  %2432 = vmatpush3.bf16.msra.mxu1 %v2674_v36  ;;  %v2676_v38 = vld [vmem:[#allocation8 + $0x28] sm:$0xff]  }
 0x14f   : > { %v730_v47 = vadd.f32 %v729_v44, %v3102_v30  ;;  %1431 = vmatprep.mubr.bf16.mxu1 %v831_v39  ;;  %v618_v50 = vpop.f32.mrf.mxu0  ;;  %1319 = vmatmul.mubr.bf16.gmra.mxu0 %v828_v40  ;;  %v795_v59 = vmax.f32 %v728_v45, 0.0  ;;  %v904_v39 = vld [vmem:[#allocation7] sm:$0x3] }
 0x150   : > { %v731_v51 = vpop.f32.mrf.mxu1  ;;  %1432 = vmatmul.mubr.bf16.gmra.mxu1 %v830_v41  ;;  %v619_v52 = vadd.f32 %v618_v50, %v3094_v27  ;;  %v796_v54 = vmax.f32 %v617_v46, 0.0  ;;  %2433 = vmatprep.subr.bf16.mxu1 %v2675_v37  ;;  %v3215_v40 = vrot.slane %v904_v39, %v416_v20  ;;  %v3219_v41 = vrot.slane %v904_v39, %v412_v22 }
 0x151   : > { %v732_v53 = vadd.f32 %v731_v51, %v3096_v28  ;;  %v798_v55 = vmax.f32 %v730_v47, 0.0  ;;  %v622_v56 = vpop.f32.mrf.mxu0 }
 0x152   : > { %v735_v57 = vpop.f32.mrf.mxu1  ;;  %v797_v60 = vmax.f32 %v619_v52, 0.0  ;;  %v832_v5 = vpack.c.bf16 %v796_v54, %v792_v62  ;;  %v623_v12 = vadd.f32 %v622_v56, %v3100_v29  ;;  %2434 = vmatpush3.bf16.msra.mxu1 %v2675_v37 }
 0x153   : > { %v799_v61 = vmax.f32 %v732_v53, 0.0  ;;  %v624_v1 = vpop.f32.mrf.mxu0  ;;  %v834_v6 = vpack.c.bf16 %v798_v55, %v794_v63  ;;  %v736_v13 = vadd.f32 %v735_v57, %v3102_v30  ;;  %2435 = vmatprep.subr.bf16.mxu1 %v2676_v38 }
 0x154   : > { %v737_v2 = vpop.f32.mrf.mxu1  ;;  %v833_v3 = vpack.c.bf16 %v797_v60, %v793_v58  ;;  %v625_v7 = vadd.f32 %v624_v1, %v3094_v27  ;;  %v800_v31 = vmax.f32 %v623_v12, 0.0 }
 0x155   : > { %v835_v4 = vpack.c.bf16 %v799_v61, %v795_v59  ;;  %v626_v8 = vpop.f32.mrf.mxu0  ;;  %v738_v0 = vadd.f32 %v737_v2, %v3096_v28  ;;  %v802_v32 = vmax.f32 %v736_v13, 0.0 }
 0x156   : > { %v739_v9 = vpop.f32.mrf.mxu1  ;;  %v627_v10 = vadd.f32 %v626_v8, %v3100_v29  ;;  %1328 = vmatprep.mubr.bf16.mxu0 %v833_v3  ;;  %v801_v23 = vmax.f32 %v625_v7, 0.0  ;;  %2436 = vmatpush3.bf16.msra.mxu1 %v2676_v38 }
 0x157   : > { %v740_v11 = vadd.f32 %v739_v9, %v3102_v30  ;;  %1441 = vmatprep.mubr.bf16.mxu1 %v835_v4  ;;  %v628_v14 = vpop.f32.mrf.mxu0  ;;  %1329 = vmatmul.mubr.bf16.gmra.mxu0 %v832_v5  ;;  %v803_v24 = vmax.f32 %v738_v0, 0.0 }
 0x158   : > { %v741_v15 = vpop.f32.mrf.mxu1  ;;  %1442 = vmatmul.mubr.bf16.gmra.mxu1 %v834_v6  ;;  %v629_v16 = vadd.f32 %v628_v14, %v3094_v27  ;;  %v804_v18 = vmax.f32 %v627_v10, 0.0  ;;  %v2671_v27 = vld [vmem:[%s3346_s5 + $0x8] sm:$0xff]  }
 0x159   : > { %v742_v17 = vadd.f32 %v741_v15, %v3096_v28  ;;  %v806_v21 = vmax.f32 %v740_v11, 0.0  ;;  %2364 = vmatpush3.bf16.msra.mxu0 %v2671_v27  ;;  %v2672_v28 = vld [vmem:[%s3346_s5 + $0x40] sm:$0xff]  }
 0x15a   : > { %v805_v25 = vmax.f32 %v629_v16, 0.0  ;;  %v836_v34 = vpack.c.bf16 %v804_v18, %v800_v31  ;;  %2365 = vmatprep.subr.bf16.mxu0 %v2672_v28 }
 0x15b   : > { %v807_v26 = vmax.f32 %v742_v17, 0.0  ;;  %v838_v30 = vpack.c.bf16 %v806_v21, %v802_v32 }
 0x15c   : > { %v837_v33 = vpack.c.bf16 %v805_v25, %v801_v23 }
 0x15d   : > { %v839_v29 = vpack.c.bf16 %v807_v26, %v803_v24  ;;  %2366 = vmatpush3.bf16.msra.mxu0 %v2673_v35 }
 0x15e   : > { %1338 = vmatprep.mubr.bf16.mxu0 %v837_v33 }
 0x15f   : > { %1451 = vmatprep.mubr.bf16.mxu1 %v839_v29  ;;  %1339 = vmatmul.mubr.bf16.gmra.mxu0 %v836_v34 }
 0x160   : > { %1452 = vmatmul.mubr.bf16.gmra.mxu1 %v838_v30 }
 0x1e7   : > { %v1270_v42 = vpop.f32.mrf.mxu0 }
 0x1e8   : > { %v1383_v43 = vpop.f32.mrf.mxu1  ;;  %v1271_v47 = vadd.f32 %v1270_v42, %v3219_v41 }
 0x1e9   : > { %v1272_v44 = vpop.f32.mrf.mxu0 }
 0x1ea   : > { %v1385_v45 = vpop.f32.mrf.mxu1  ;;  %v1273_v46 = vadd.f32 %v1272_v44, %v3215_v40  ;;  %v1384_v22 = vadd.f32 %v1383_v43, %v1271_v47 }
 0x1eb   : > { %v1274_v48 = vpop.f32.mrf.mxu0 }
 0x1ec   : > { %v1387_v49 = vpop.f32.mrf.mxu1  ;;  %v1275_v50 = vadd.f32 %v1274_v48, %v3219_v41  ;;  %v1386_v20 = vadd.f32 %v1385_v45, %v1273_v46  ;;  %v1462_v63 = vmax.f32 %v1384_v22, 0.0 }
 0x1ed   : > { %v1276_v51 = vpop.f32.mrf.mxu0 }
 0x1ee   : > { %v1389_v52 = vpop.f32.mrf.mxu1  ;;  %v1388_v53 = vadd.f32 %v1387_v49, %v1275_v50  ;;  %v1277_v19 = vadd.f32 %v1276_v51, %v3215_v40  ;;  %v1463_v60 = vmax.f32 %v1386_v20, 0.0 }
 0x1ef   : > { %v1280_v54 = vpop.f32.mrf.mxu0 }
 0x1f0   : > { %v1393_v55 = vpop.f32.mrf.mxu1  ;;  %v1390_v56 = vadd.f32 %v1389_v52, %v1277_v19  ;;  %v1464_v57 = vmax.f32 %v1388_v53, 0.0  ;;  %v1281_v1 = vadd.f32 %v1280_v54, %v3219_v41 }
 0x1f1   : > { %v1282_v58 = vpop.f32.mrf.mxu0 }
 0x1f2   : > { %v1395_v59 = vpop.f32.mrf.mxu1  ;;  %v1465_v61 = vmax.f32 %v1390_v56, 0.0  ;;  %v1283_v62 = vadd.f32 %v1282_v58, %v3215_v40  ;;  %v1494_v6 = vpack.c.bf16 %v1464_v57, %v1462_v63  ;;  %v1394_v11 = vadd.f32 %v1393_v55, %v1281_v1 }
 0x1f3   : > { %v1284_v2 = vpop.f32.mrf.mxu0 }
 0x1f4   : > { %v1397_v3 = vpop.f32.mrf.mxu1  ;;  %v1495_v4 = vpack.c.bf16 %v1465_v61, %v1463_v60  ;;  %v1285_v5 = vadd.f32 %v1284_v2, %v3219_v41  ;;  %v1396_v9 = vadd.f32 %v1395_v59, %v1283_v62  ;;  %v1466_v24 = vmax.f32 %v1394_v11, 0.0 }
 0x1f5   : > { %v1286_v7 = vpop.f32.mrf.mxu0 }
 0x1f6   : > { %v1399_v8 = vpop.f32.mrf.mxu1  ;;  %v1398_v0 = vadd.f32 %v1397_v3, %v1285_v5  ;;  %v1287_v10 = vadd.f32 %v1286_v7, %v3215_v40  ;;  %1677 = vmatprep.mubr.bf16.mxu0 %v1495_v4  ;;  %v1467_v18 = vmax.f32 %v1396_v9, 0.0 }
 0x1f7   : > { %v1290_v12 = vpop.f32.mrf.mxu0  ;;  %1678 = vmatmul.mubr.bf16.vlgmr.msra.gmra.mxu0 %v1494_v6 }
 0x1f8   : > { %v1403_v13 = vpop.f32.mrf.mxu1  ;;  %v1400_v14 = vadd.f32 %v1399_v8, %v1287_v10  ;;  %v1468_v15 = vmax.f32 %v1398_v0, 0.0  ;;  %v1291_v25 = vadd.f32 %v1290_v12, %v3219_v41 }
 0x1f9   : > { %v1292_v16 = vpop.f32.mrf.mxu0 }
 0x1fa   : > { %v1405_v17 = vpop.f32.mrf.mxu1  ;;  %v1469_v21 = vmax.f32 %v1400_v14, 0.0  ;;  %v1293_v23 = vadd.f32 %v1292_v16, %v3215_v40  ;;  %v1496_v29 = vpack.c.bf16 %v1468_v15, %v1466_v24  ;;  %v1404_v36 = vadd.f32 %v1403_v13, %v1291_v25 }
 0x1fb   : > { %v1294_v26 = vpop.f32.mrf.mxu0 }
 0x1fc   : > { %v1407_v31 = vpop.f32.mrf.mxu1  ;;  %v1497_v32 = vpack.c.bf16 %v1469_v21, %v1467_v18  ;;  %v1295_v33 = vadd.f32 %v1294_v26, %v3219_v41  ;;  %v1406_v27 = vadd.f32 %v1405_v17, %v1293_v23  ;;  %v1470_v48 = vmax.f32 %v1404_v36, 0.0 }
 0x1fd   : > { %v1296_v34 = vpop.f32.mrf.mxu0 }
 0x1fe   : > { %v1409_v30 = vpop.f32.mrf.mxu1  ;;  %v1408_v28 = vadd.f32 %v1407_v31, %v1295_v33  ;;  %v1297_v35 = vadd.f32 %v1296_v34, %v3215_v40  ;;  %1685 = vmatprep.mubr.bf16.mxu0 %v1497_v32  ;;  %v1471_v45 = vmax.f32 %v1406_v27, 0.0 }
 0x1ff   : > { %v1300_v37 = vpop.f32.mrf.mxu0  ;;  %1686 = vmatmul.mubr.bf16.gmra.mxu0 %v1496_v29 }
 0x200   : > { %v1413_v38 = vpop.f32.mrf.mxu1  ;;  %v1410_v39 = vadd.f32 %v1409_v30, %v1297_v35  ;;  %v1472_v42 = vmax.f32 %v1408_v28, 0.0  ;;  %v1301_v49 = vadd.f32 %v1300_v37, %v3219_v41 }
 0x201   : > { %v1302_v43 = vpop.f32.mrf.mxu0 }
 0x202   : > { %v1415_v44 = vpop.f32.mrf.mxu1  ;;  %v1473_v46 = vmax.f32 %v1410_v39, 0.0  ;;  %v1303_v47 = vadd.f32 %v1302_v43, %v3215_v40  ;;  %v1498_v53 = vpack.c.bf16 %v1472_v42, %v1470_v48  ;;  %v1414_v57 = vadd.f32 %v1413_v38, %v1301_v49 }
 0x203   : > { %v1304_v50 = vpop.f32.mrf.mxu0 }
 0x204   : > { %v1417_v51 = vpop.f32.mrf.mxu1  ;;  %v1499_v52 = vpack.c.bf16 %v1473_v46, %v1471_v45  ;;  %v1305_v20 = vadd.f32 %v1304_v50, %v3219_v41  ;;  %v1416_v54 = vadd.f32 %v1415_v44, %v1303_v47  ;;  %v1474_v4 = vmax.f32 %v1414_v57, 0.0 }
 0x205   : > { %v1306_v19 = vpop.f32.mrf.mxu0 }
 0x206   : > { %v1419_v22 = vpop.f32.mrf.mxu1  ;;  %v1418_v55 = vadd.f32 %v1417_v51, %v1305_v20  ;;  %v1307_v56 = vadd.f32 %v1306_v19, %v3215_v40  ;;  %1693 = vmatprep.mubr.bf16.mxu0 %v1499_v52  ;;  %v1475_v1 = vmax.f32 %v1416_v54, 0.0 }
 0x207   : > { %v1310_v58 = vpop.f32.mrf.mxu0  ;;  %1694 = vmatmul.mubr.bf16.gmra.mxu0 %v1498_v53 }
 0x208   : > { %v1423_v59 = vpop.f32.mrf.mxu1  ;;  %v1420_v60 = vadd.f32 %v1419_v22, %v1307_v56  ;;  %v1476_v61 = vmax.f32 %v1418_v55, 0.0  ;;  %v1311_v5 = vadd.f32 %v1310_v58, %v3219_v41 }
 0x209   : > { %v1312_v62 = vpop.f32.mrf.mxu0 }
 0x20a   : > { %v1425_v63 = vpop.f32.mrf.mxu1  ;;  %v1477_v2 = vmax.f32 %v1420_v60, 0.0  ;;  %v1313_v3 = vadd.f32 %v1312_v62, %v3215_v40  ;;  %v1500_v0 = vpack.c.bf16 %v1476_v61, %v1474_v4  ;;  %v1424_v15 = vadd.f32 %v1423_v59, %v1311_v5 }
 0x20b   : > { %v1314_v6 = vpop.f32.mrf.mxu0 }
 0x20c   : > { %v1427_v7 = vpop.f32.mrf.mxu1  ;;  %v1501_v8 = vpack.c.bf16 %v1477_v2, %v1475_v1  ;;  %v1315_v9 = vadd.f32 %v1314_v6, %v3219_v41  ;;  %v1426_v12 = vadd.f32 %v1425_v63, %v1313_v3  ;;  %v1478_v32 = vmax.f32 %v1424_v15, 0.0 }
 0x20d   : > { %v1316_v10 = vpop.f32.mrf.mxu0 }
 0x20e   : > { %v1429_v11 = vpop.f32.mrf.mxu1  ;;  %v1428_v13 = vadd.f32 %v1427_v7, %v1315_v9  ;;  %v1317_v14 = vadd.f32 %v1316_v10, %v3215_v40  ;;  %1701 = vmatprep.mubr.bf16.mxu0 %v1501_v8  ;;  %v1479_v25 = vmax.f32 %v1426_v12, 0.0 }
 0x20f   : > { %v1320_v16 = vpop.f32.mrf.mxu0  ;;  %1702 = vmatmul.mubr.bf16.gmra.mxu0 %v1500_v0 }
 0x210   : > { %v1433_v17 = vpop.f32.mrf.mxu1  ;;  %v1430_v18 = vadd.f32 %v1429_v11, %v1317_v14  ;;  %v1480_v21 = vmax.f32 %v1428_v13, 0.0  ;;  %v1321_v33 = vadd.f32 %v1320_v16, %v3219_v41 }
 0x211   : > { %v1322_v23 = vpop.f32.mrf.mxu0 }
 0x212   : > { %v1435_v24 = vpop.f32.mrf.mxu1  ;;  %v1481_v26 = vmax.f32 %v1430_v18, 0.0  ;;  %v1323_v31 = vadd.f32 %v1322_v23, %v3215_v40  ;;  %v1502_v28 = vpack.c.bf16 %v1480_v21, %v1478_v32  ;;  %v1434_v42 = vadd.f32 %v1433_v17, %v1321_v33 }
 0x213   : > { %v1324_v29 = vpop.f32.mrf.mxu0 }
 0x214   : > { %v1437_v34 = vpop.f32.mrf.mxu1  ;;  %v1503_v30 = vpack.c.bf16 %v1481_v26, %v1479_v25  ;;  %v1325_v27 = vadd.f32 %v1324_v29, %v3219_v41  ;;  %v1436_v37 = vadd.f32 %v1435_v24, %v1323_v31  ;;  %v1482_v52 = vmax.f32 %v1434_v42, 0.0  ;;  %v2678_v29 = vld [vmem:[#allocation8 + $0x18] sm:$0xff]  }
 0x215   : > { %v1326_v35 = vpop.f32.mrf.mxu0 }
 0x216   : > { %v1439_v36 = vpop.f32.mrf.mxu1  ;;  %v1438_v38 = vadd.f32 %v1437_v34, %v1325_v27  ;;  %v1327_v39 = vadd.f32 %v1326_v35, %v3215_v40  ;;  %1709 = vmatprep.mubr.bf16.mxu0 %v1503_v30  ;;  %v1483_v49 = vmax.f32 %v1436_v37, 0.0  ;;  %v2680_v34 = vld [vmem:[#allocation8 + $0x8] sm:$0xff]   ;;  %v2681_v30 = vld [vmem:[#allocation8] sm:$0xff]  }
 0x217   : > { %v1330_v43 = vpop.f32.mrf.mxu0  ;;  %1710 = vmatmul.mubr.bf16.gmra.mxu0 %v1502_v28 }
 0x218   : > { %v1443_v44 = vpop.f32.mrf.mxu1  ;;  %v1440_v45 = vadd.f32 %v1439_v36, %v1327_v39  ;;  %v1484_v46 = vmax.f32 %v1438_v38, 0.0  ;;  %v1331_v20 = vadd.f32 %v1330_v43, %v3219_v41  ;;  %v3256_v36 = vld [vmem:[%s3347_s6] ss:$0 sm:$0xff] }
 0x219   : > { %v1332_v47 = vpop.f32.mrf.mxu0 }
 0x21a   : > { %v1445_v48 = vpop.f32.mrf.mxu1  ;;  %v1485_v50 = vmax.f32 %v1440_v45, 0.0  ;;  %v1333_v51 = vadd.f32 %v1332_v47, %v3215_v40  ;;  %v1504_v55 = vpack.c.bf16 %v1484_v46, %v1482_v52  ;;  %v1444_v61 = vadd.f32 %v1443_v44, %v1331_v20 }
 0x21b   : > { %v1334_v53 = vpop.f32.mrf.mxu0 }
 0x21c   : > { %v1447_v19 = vpop.f32.mrf.mxu1  ;;  %v1505_v22 = vpack.c.bf16 %v1485_v50, %v1483_v49  ;;  %v1335_v54 = vadd.f32 %v1334_v53, %v3219_v41  ;;  %v1446_v58 = vadd.f32 %v1445_v48, %v1333_v51  ;;  %v1486_v8 = vmax.f32 %v1444_v61, 0.0 }
 0x21d   : > { %v1336_v56 = vpop.f32.mrf.mxu0 }
 0x21e   : > { %v1449_v57 = vpop.f32.mrf.mxu1  ;;  %v1448_v59 = vadd.f32 %v1447_v19, %v1335_v54  ;;  %v1337_v60 = vadd.f32 %v1336_v56, %v3215_v40  ;;  %1717 = vmatprep.mubr.bf16.mxu0 %v1505_v22  ;;  %v1487_v5 = vmax.f32 %v1446_v58, 0.0 }
 0x21f   : > { %v1340_v62 = vpop.f32.mrf.mxu0  ;;  %1718 = vmatmul.mubr.bf16.gmra.mxu0 %v1504_v55 }
 0x220   : > { %v1453_v63 = vpop.f32.mrf.mxu1  ;;  %v1450_v1 = vadd.f32 %v1449_v57, %v1337_v60  ;;  %v1488_v2 = vmax.f32 %v1448_v59, 0.0  ;;  %v1341_v9 = vadd.f32 %v1340_v62, %v3219_v41 }
 0x221   : > { %v1342_v3 = vpop.f32.mrf.mxu0 }
 0x222   : > { %v1455_v4 = vpop.f32.mrf.mxu1  ;;  %v1489_v6 = vmax.f32 %v1450_v1, 0.0  ;;  %v1343_v7 = vadd.f32 %v1342_v3, %v3215_v40  ;;  %v1506_v13 = vpack.c.bf16 %v1488_v2, %v1486_v8  ;;  %v1454_v18 = vadd.f32 %v1453_v63, %v1341_v9 }
 0x223   : > { %v1344_v0 = vpop.f32.mrf.mxu0 }
 0x224   : > { %v1457_v10 = vpop.f32.mrf.mxu1  ;;  %v1507_v11 = vpack.c.bf16 %v1489_v6, %v1487_v5  ;;  %v1345_v12 = vadd.f32 %v1344_v0, %v3219_v41  ;;  %v1456_v15 = vadd.f32 %v1455_v4, %v1343_v7  ;;  %v1490_v31 = vmax.f32 %v1454_v18, 0.0  ;;  %v2677_v41 = vld [vmem:[#allocation8 + $0x20] sm:$0xff]  }
 0x225   : > { %v1346_v14 = vpop.f32.mrf.mxu0  ;;  %2437 = vmatprep.subr.bf16.mxu1 %v2677_v41 }
 0x226   : > { %v1458_v16 = vadd.f32 %v1457_v10, %v1345_v12  ;;  %v1347_v17 = vadd.f32 %v1346_v14, %v3215_v40  ;;  %1725 = vmatprep.mubr.bf16.mxu0 %v1507_v11  ;;  %v1459_v21 = vpop.f32.mrf.mxu1  ;;  %v1491_v25 = vmax.f32 %v1456_v15, 0.0  ;;  %2438 = vmatpush3.bf16.msra.mxu1 %v2677_v41  ;;  %v2679_v40 = vld [vmem:[#allocation8 + $0x10] sm:$0xff]  }
 0x227   : > { %1726 = vmatmul.mubr.bf16.gmra.mxu0 %v1506_v13  ;;  %2439 = vmatprep.subr.bf16.mxu1 %v2678_v29 }
 0x228   : > { %v1460_v23 = vadd.f32 %v1459_v21, %v1347_v17  ;;  %v1492_v24 = vmax.f32 %v1458_v16, 0.0 }
 0x22a   : > { %v1493_v26 = vmax.f32 %v1460_v23, 0.0  ;;  %v1508_v33 = vpack.c.bf16 %v1492_v24, %v1490_v31  ;;  %2440 = vmatpush3.bf16.msra.mxu1 %v2678_v29 }
 0x22b   : > { %2441 = vmatprep.subr.bf16.mxu1 %v2679_v40 }
 0x22c   : > { %v1509_v32 = vpack.c.bf16 %v1493_v26, %v1491_v25 }
 0x22e   : > { %1733 = vmatprep.mubr.bf16.mxu0 %v1509_v32  ;;  %2442 = vmatpush3.bf16.msra.mxu1 %v2679_v40 }
 0x22f   : > { %1734 = vmatmul.mubr.bf16.gmra.mxu0 %v1508_v33  ;;  %2443 = vmatprep.subr.bf16.mxu1 %v2680_v34 }
 0x232   : > { %2444 = vmatpush3.bf16.msra.mxu1 %v2680_v34 }
 0x233   : > { %2445 = vmatprep.subr.bf16.mxu1 %v2681_v30 }
 0x236   : > { %2446 = vmatpush3.bf16.msra.mxu1 %v2681_v30 }
 0x2b7   : > { %v2367_v27 = vpop.f32.mrf.mxu0 }
 0x2b9   : > { %v2368_v28 = vpop.f32.mrf.mxu0 }
 0x2ba   : > { %v2369_v35 = vadd.f32 %v2368_v28, %v2367_v27 }
 0x2bb   : > { %v2370_v37 = vpop.f32.mrf.mxu0 }
 0x2bc   : > { %v1680_v39 = vadd.f32 %v2369_v35, %v3256_v36 }
 0x2bd   : > { %v2371_v38 = vpop.f32.mrf.mxu0 }
 0x2be   : > { %v2372_v42 = vadd.f32 %v2371_v38, %v2370_v37  ;;  %v1742_v46 = vmax.f32 %v1680_v39, 0.0 }
 0x2bf   : > { %v2373_v43 = vpop.f32.mrf.mxu0 }
 0x2c0   : > { %v1683_v44 = vadd.f32 %v2372_v42, %v3256_v36 }
 0x2c1   : > { %v2374_v45 = vpop.f32.mrf.mxu0 }
 0x2c2   : > { %v1743_v47 = vmax.f32 %v1683_v44, 0.0  ;;  %v2375_v48 = vadd.f32 %v2374_v45, %v2373_v43 }
 0x2c3   : > { %v2376_v49 = vpop.f32.mrf.mxu0 }
 0x2c4   : > { %v1758_v50 = vpack.c.bf16 %v1743_v47, %v1742_v46  ;;  %v1688_v52 = vadd.f32 %v2375_v48, %v3256_v36 }
 0x2c5   : > { %v2377_v51 = vpop.f32.mrf.mxu0 }
 0x2c6   : > { %v2378_v20 = vadd.f32 %v2377_v51, %v2376_v49  ;;  %2447 = vmatprep.mubr.bf16.mxu1 %v1758_v50  ;;  %v1744_v54 = vmax.f32 %v1688_v52, 0.0 }
 0x2c7   : > { %v2379_v53 = vpop.f32.mrf.mxu0 }
 0x2c8   : > { %v1691_v19 = vadd.f32 %v2378_v20, %v3256_v36 }
 0x2c9   : > { %v2380_v22 = vpop.f32.mrf.mxu0 }
 0x2ca   : > { %v1745_v55 = vmax.f32 %v1691_v19, 0.0  ;;  %v2381_v56 = vadd.f32 %v2380_v22, %v2379_v53 }
 0x2cb   : > { %v2382_v57 = vpop.f32.mrf.mxu0 }
 0x2cc   : > { %v1759_v58 = vpack.c.bf16 %v1745_v55, %v1744_v54  ;;  %v1696_v60 = vadd.f32 %v2381_v56, %v3256_v36 }
 0x2cd   : > { %v2383_v59 = vpop.f32.mrf.mxu0 }
 0x2ce   : > { %v2384_v61 = vadd.f32 %v2383_v59, %v2382_v57  ;;  %2448 = vmatmul.mubr.bf16.vlgmr.msra.gmra.mxu1 %v1759_v58  ;;  %v1746_v2 = vmax.f32 %v1696_v60, 0.0  ;;  %v2257_v59 = vld [vmem:[%s3349_s8] ss:$0 sm:$0xff] }
 0x2cf   : > { %v2385_v62 = vpop.f32.mrf.mxu0 }
 0x2d0   : > { %v1699_v63 = vadd.f32 %v2384_v61, %v3256_v36 }
 0x2d1   : > { %v2386_v1 = vpop.f32.mrf.mxu0 }
 0x2d2   : > { %v1747_v3 = vmax.f32 %v1699_v63, 0.0  ;;  %v2387_v4 = vadd.f32 %v2386_v1, %v2385_v62 }
 0x2d3   : > { %v2388_v5 = vpop.f32.mrf.mxu0 }
 0x2d4   : > { %v1760_v6 = vpack.c.bf16 %v1747_v3, %v1746_v2  ;;  %v1704_v8 = vadd.f32 %v2387_v4, %v3256_v36 }
 0x2d5   : > { %v2389_v7 = vpop.f32.mrf.mxu0 }
 0x2d6   : > { %v2390_v9 = vadd.f32 %v2389_v7, %v2388_v5  ;;  %2451 = vmatprep.mubr.bf16.mxu1 %v1760_v6  ;;  %v1748_v12 = vmax.f32 %v1704_v8, 0.0 }
 0x2d7   : > { %v2391_v0 = vpop.f32.mrf.mxu0 }
 0x2d8   : > { %v1707_v10 = vadd.f32 %v2390_v9, %v3256_v36 }
 0x2d9   : > { %v2392_v11 = vpop.f32.mrf.mxu0 }
 0x2da   : > { %v1749_v13 = vmax.f32 %v1707_v10, 0.0  ;;  %v2393_v14 = vadd.f32 %v2392_v11, %v2391_v0 }
 0x2db   : > { %v2394_v15 = vpop.f32.mrf.mxu0 }
 0x2dc   : > { %v1761_v16 = vpack.c.bf16 %v1749_v13, %v1748_v12  ;;  %v1712_v18 = vadd.f32 %v2393_v14, %v3256_v36 }
 0x2dd   : > { %v2395_v17 = vpop.f32.mrf.mxu0 }
 0x2de   : > { %v2396_v21 = vadd.f32 %v2395_v17, %v2394_v15  ;;  %2452 = vmatmul.mubr.bf16.gmra.mxu1 %v1761_v16  ;;  %v1750_v26 = vmax.f32 %v1712_v18, 0.0 }
 0x2df   : > { %v2397_v23 = vpop.f32.mrf.mxu0 }
 0x2e0   : > { %v1715_v24 = vadd.f32 %v2396_v21, %v3256_v36 }
 0x2e1   : > { %v2398_v25 = vpop.f32.mrf.mxu0 }
 0x2e2   : > { %v1751_v31 = vmax.f32 %v1715_v24, 0.0  ;;  %v2399_v32 = vadd.f32 %v2398_v25, %v2397_v23 }
 0x2e3   : > { %v2400_v33 = vpop.f32.mrf.mxu0 }
 0x2e4   : > { %v1762_v41 = vpack.c.bf16 %v1751_v31, %v1750_v26  ;;  %v1720_v40 = vadd.f32 %v2399_v32, %v3256_v36 }
 0x2e5   : > { %v2401_v29 = vpop.f32.mrf.mxu0 }
 0x2e6   : > { %v2402_v34 = vadd.f32 %v2401_v29, %v2400_v33  ;;  %2455 = vmatprep.mubr.bf16.mxu1 %v1762_v41  ;;  %v1752_v35 = vmax.f32 %v1720_v40, 0.0 }
 0x2e7   : > { %v2403_v30 = vpop.f32.mrf.mxu0 }
 0x2e8   : > { %v1723_v27 = vadd.f32 %v2402_v34, %v3256_v36 }
 0x2e9   : > { %v2404_v28 = vpop.f32.mrf.mxu0 }
 0x2ea   : > { %v1753_v37 = vmax.f32 %v1723_v27, 0.0  ;;  %v2405_v38 = vadd.f32 %v2404_v28, %v2403_v30 }
 0x2eb   : > { %v2406_v39 = vpop.f32.mrf.mxu0 }
 0x2ec   : > { %v1763_v42 = vpack.c.bf16 %v1753_v37, %v1752_v35  ;;  %v1728_v44 = vadd.f32 %v2405_v38, %v3256_v36 }
 0x2ed   : > { %v2407_v43 = vpop.f32.mrf.mxu0 }
 0x2ee   : > { %v2408_v45 = vadd.f32 %v2407_v43, %v2406_v39  ;;  %2456 = vmatmul.mubr.bf16.gmra.mxu1 %v1763_v42  ;;  %v1754_v49 = vmax.f32 %v1728_v44, 0.0 }
 0x2ef   : > { %v2409_v46 = vpop.f32.mrf.mxu0 }
 0x2f0   : > { %v1731_v47 = vadd.f32 %v2408_v45, %v3256_v36 }
 0x2f1   : > { %v2410_v48 = vpop.f32.mrf.mxu0 }
 0x2f2   : > { %v1755_v50 = vmax.f32 %v1731_v47, 0.0  ;;  %v2411_v51 = vadd.f32 %v2410_v48, %v2409_v46 }
 0x2f3   : > { %v2412_v52 = vpop.f32.mrf.mxu0 }
 0x2f4   : > { %v1764_v20 = vpack.c.bf16 %v1755_v50, %v1754_v49  ;;  %v1736_v19 = vadd.f32 %v2411_v51, %v3256_v36 }
 0x2f5   : > { %v2413_v53 = vpop.f32.mrf.mxu0 }
 0x2f6   : > { %v2414_v22 = vadd.f32 %v2413_v53, %v2412_v52  ;;  %2459 = vmatprep.mubr.bf16.mxu1 %v1764_v20  ;;  %v1756_v55 = vmax.f32 %v1736_v19, 0.0 }
 0x2f8   : > { %v1739_v54 = vadd.f32 %v2414_v22, %v3256_v36 }
 0x2fa   : > { %v1757_v56 = vmax.f32 %v1739_v54, 0.0 }
 0x2fc   : > { %v1765_v57 = vpack.c.bf16 %v1757_v56, %v1756_v55 }
 0x2fe   : > { %2460 = vmatmul.mubr.bf16.gmra.mxu1 %v1765_v57 }
 0x38e   : > { %v2449_v58 = vpop.f32.mrf.mxu1 }
 0x38f   : > { %v1880_v62 = vadd.f32 %v2449_v58, %v2257_v59 }
 0x390   : > { %v1871_v60 = vpop.f32.mrf.mxu1 }
 0x391   : > { %v1872_v2 = vadd.f32 %v2257_v59, %v1871_v60 }
 0x392   : > { %v2450_v61 = vpop.f32.mrf.mxu1 }
 0x393   : > { %v1883_v63 = vadd.f32 %v2450_v61, %v2257_v59 }
 0x394   : > { %v1874_v1 = vpop.f32.mrf.mxu1 }
 0x395   : > { %v2312_v3 = vpack.c.bf16 %v1883_v63, %v1880_v62  ;;  %v1875_v36 = vadd.f32 %v2257_v59, %v1874_v1 }
 0x397   : > { %2344 = vst [vmem:[%s3280_s28 + $0x8] sm:$0xff] %v2312_v3   ;;  %v2307_v4 = vpack.c.bf16 %v1875_v36, %v1872_v2 }
 0x399   : > { %2308 = vst [vmem:[%s3280_s28] sm:$0xff] %v2307_v4  }
 0x39e   : > { %v2453_v5 = vpop.f32.mrf.mxu1 }
 0x39f   : > { %v1896_v8 = vadd.f32 %v2453_v5, %v2257_v59 }
 0x3a0   : > { %v1887_v6 = vpop.f32.mrf.mxu1 }
 0x3a1   : > { %v1888_v10 = vadd.f32 %v2257_v59, %v1887_v6 }
 0x3a2   : > { %v2454_v7 = vpop.f32.mrf.mxu1 }
 0x3a3   : > { %v1899_v9 = vadd.f32 %v2454_v7, %v2257_v59 }
 0x3a4   : > { %v1890_v0 = vpop.f32.mrf.mxu1 }
 0x3a5   : > { %v2322_v11 = vpack.c.bf16 %v1899_v9, %v1896_v8  ;;  %v1891_v12 = vadd.f32 %v2257_v59, %v1890_v0 }
 0x3a7   : > { %2346 = vst [vmem:[%s3280_s28 + $0x18] sm:$0xff] %v2322_v11   ;;  %v2317_v13 = vpack.c.bf16 %v1891_v12, %v1888_v10 }
 0x3a9   : > { %2345 = vst [vmem:[%s3280_s28 + $0x10] sm:$0xff] %v2317_v13  }
 0x3ae   : > { %v2457_v14 = vpop.f32.mrf.mxu1 }
 0x3af   : > { %v1912_v17 = vadd.f32 %v2457_v14, %v2257_v59 }
 0x3b0   : > { %v1903_v15 = vpop.f32.mrf.mxu1 }
 0x3b1   : > { %v1904_v23 = vadd.f32 %v2257_v59, %v1903_v15 }
 0x3b2   : > { %v2458_v16 = vpop.f32.mrf.mxu1 }
 0x3b3   : > { %v1915_v18 = vadd.f32 %v2458_v16, %v2257_v59 }
 0x3b4   : > { %v1906_v21 = vpop.f32.mrf.mxu1 }
 0x3b5   : > { %v2332_v24 = vpack.c.bf16 %v1915_v18, %v1912_v17  ;;  %v1907_v25 = vadd.f32 %v2257_v59, %v1906_v21 }
 0x3b7   : > { %2348 = vst [vmem:[%s3280_s28 + $0x28] sm:$0xff] %v2332_v24   ;;  %v2327_v26 = vpack.c.bf16 %v1907_v25, %v1904_v23 }
 0x3b9   : > { %2347 = vst [vmem:[%s3280_s28 + $0x20] sm:$0xff] %v2327_v26  }
 0x3be   : > { %v2461_v31 = vpop.f32.mrf.mxu1 }
 0x3bf   : > { %v1928_v41 = vadd.f32 %v2461_v31, %v2257_v59 }
 0x3c0   : > { %v1919_v32 = vpop.f32.mrf.mxu1 }
 0x3c1   : > { %v1920_v34 = vadd.f32 %v2257_v59, %v1919_v32 }
 0x3c2   : > { %v2462_v33 = vpop.f32.mrf.mxu1 }
 0x3c3   : > { %v1931_v29 = vadd.f32 %v2462_v33, %v2257_v59 }
 0x3c4   : > { %v1922_v40 = vpop.f32.mrf.mxu1 }
 0x3c5   : > { %v2342_v30 = vpack.c.bf16 %v1931_v29, %v1928_v41  ;;  %v1923_v27 = vadd.f32 %v2257_v59, %v1922_v40 }
 0x3c7   : > { %2350 = vst [vmem:[%s3280_s28 + $0x38] sm:$0xff] %v2342_v30   ;;  %v2337_v28 = vpack.c.bf16 %v1923_v27, %v1920_v34 }
 0x3c9   : > { %2349 = vst [vmem:[%s3280_s28 + $0x30] sm:$0xff] %v2337_v28  }
 0x3ca   : > { %2799 = shalt.err (!%p2796_p8)
}
 0x3cb   : > { %s2800_s22 = scalar_lea.hbm %s3296_s16, 1024  ;;  %s2804_s24 = scalar_lea.hbm %s3350_s9, 2048 }
 0x3cc   : > { %p2801_p13 = scmp.ne.s32.totalorder %s3296_s16, %s2800_s22  ;;  %p2805_p6 = scmp.lt.s32.totalorder %s3296_s16, %s3350_s9 }
 0x3cd   : > { %p2806_p12 = scmp.lt.s32.totalorder %s2804_s24, %s2800_s22 }
 0x3ce   : > { %p2802_p11 = pnand %p2801_p13, %p3363_p1 }
 0x3cf   : > { %p2807_p10 = por %p2806_p12, %p2805_p6 }
 0x3d0   : > { %p2803_p0 = pneg %p2802_p11 }
 0x3d2   : > { %p2808_p9 = pnand %p2807_p10, %p2803_p0 }
 0x3d4   : > { %2811 = shalt.err (!%p2808_p9)
}
 0x3d5   : > { %s2870_s13 = smov 64   ;;  %s2871_s17 = smov 4  }
 0x3d6   : > { %2479 = dma.vmem_to_hbm [thread:$0]  (%p3363_p1), %s3290_s21, 1024, %s3296_s16, %s3301_s26, %s2870_s13, %s2870_s13, %s2871_s17  }
 0x3d7 PF: > { %p2506_p3 = scmp.ge.s32.totalorder %s2858_s12, 2  ;;  %s2043_s25 = sand.u32 1, %s2846_s30  }
 0x3d8   : > { %p3364_p2 = scmp.ne.s32.totalorder %s3354_s20, 0  ;;  %s2044_s27 = scalar_lea.sflag [#allocation4], %s2043_s25 }
 0x3da   : > { %p2495_p4 = pnand %p2506_p3, %p3364_p2 }
 0x3dc   : > { %p2496_p5 = pneg %p2495_p4 }
 0x3de   : > { %2841 = dma.done.wait (%p2496_p5), %s2044_s27, 1024  }
 0x3df   : > { %2843 = vsyncadd (%p2496_p5), %s2044_s27, 4294966272  ;;  %p22_p7 = scmp.ge.s32.totalorder %s2947_s15, 4   ;;  %s3365_s30 = smov %s2850_s10 }
 0x3e0   : > { %s3366_s10 = smov %s2854_s11  ;;  %s3367_s11 = smov %s2958_s18 }
 0x3e1   : > { %s3368_s12 = smov %s2947_s15  ;;  %24 = sbr.rel (!%p22_p7) target bundleno = 6 (0x6), region = 108 }
 0x3e6   :  { %2049 = vsyncpa [#allocation3], 1 }
 0x3e7   :  { %2051 = vsyncpa [#allocation3 + $0x1], 1 }
 0x3e8   :  { %2052 = vsyncpa [#allocation6], 1 }
 0x3e9   :  { %2053 = vsyncpa [#allocation9], 1 }
 0x3ea   :  { %2054 = vsyncpa [#allocation4], 1 }
 0x3eb   :  { %2056 = vsyncpa [#allocation4 + $0x1], 1 }

</bundles_post_ra>
